<compile_context>
chip_gen: v7x
topology: tpu7x:2x2x1
jax: 0.10.0
libtpu: 0.0.40
codegen_flags: <defaults>
</compile_context>

<pallas_src>
import functools

import jax
import jax.numpy as jnp
from jax import lax
from jax.experimental import pallas as pl
from jax.experimental.pallas import tpu as pltpu


def _sigmoid(v):
    # tanh-form sigmoid: tanh runs on the EUP (separate VLIW slot), no VALU divide.
    return 0.5 * (jnp.tanh(0.5 * v) + 1.0)


# -----------------------------------------------------------------------------
# Pallas kernel: 2-layer LSTM recurrence + length masking + 2-layer MLP head.
# -----------------------------------------------------------------------------
def _lstm_eta_kernel(x_ref, mask_ref,
                     wih0_ref, b0_ref, whh0_ref,
                     wih1_ref, whh1_ref, b1_ref,
                     w1_ref, bo1_ref, w2r_ref, bo2_ref,
                     out_ref, xg_ref, hs_ref, *, T, BP, H):
    H4 = 4 * H
    H2 = w1_ref.shape[1]

    # ---- Hoisted layer-0 input projection (bias folded): one big MXU matmul. ----
    xg = jnp.dot(x_ref[...], wih0_ref[...],
                 preferred_element_type=jnp.float32) + b0_ref[...]
    xg_ref[...] = xg.reshape(T, BP, H4)          # leading-dim split: no relayout

    whh0 = whh0_ref[...]                         # [H, 4H]
    wih1 = wih1_ref[...]                         # [H, 4H]
    whh1 = whh1_ref[...]                         # [H, 4H]
    # Hoisted bias broadcast (JAX does not CSE broadcast_in_dim inside loops).
    b1b = jnp.broadcast_to(b1_ref[...], (BP, H4))

    def gate_math(gates, c):
        # 4H == 128 lanes: two full-vreg EUP passes, then 32-lane gate extracts
        # (XLU slot, off the MXU/EUP critical resources).
        sig = _sigmoid(gates)
        th = jnp.tanh(gates)
        i = sig[:, 0 * H:1 * H]
        f = sig[:, 1 * H:2 * H]
        g = th[:, 2 * H:3 * H]
        o = sig[:, 3 * H:4 * H]
        c_new = f * c + i * g
        h_new = o * jnp.tanh(c_new)
        return h_new, c_new

    def step(t, carry):
        h0, c0, h1, c1 = carry
        # Layer-1 recurrent half: depends only on h1_{t-1}; overlaps layer-0 work.
        g1_rec = jnp.dot(h1, whh1, preferred_element_type=jnp.float32) + b1b
        # Layer 0: input part precomputed, only the hidden recurrence here.
        g0 = xg_ref[t] + jnp.dot(h0, whh0, preferred_element_type=jnp.float32)
        h0, c0 = gate_math(g0, c0)
        # Layer-1 critical-path half.
        g1 = jnp.dot(h0, wih1, preferred_element_type=jnp.float32) + g1_rec
        h1, c1 = gate_math(g1, c1)
        hs_ref[t] = h1
        return (h0, c0, h1, c1)

    z0 = jnp.zeros((BP, H), jnp.float32)
    lax.fori_loop(0, T, step, (z0, z0, z0, z0), unroll=True)
    # TODO(synk): for T >> 32 switch to a partial unroll / T-chunked grid.

    # ---- MLP head + single output write, hoisted out of the recurrence. ----
    hs = hs_ref[...] * mask_ref[...]             # pack/pad_packed zero-masking
    hs2 = hs.reshape(T * BP, H)                  # leading-dim merge: no relayout
    z1 = jnp.maximum(
        jnp.dot(hs2, w1_ref[...], preferred_element_type=jnp.float32)
        + bo1_ref[...], 0.0)                     # [T*BP, H2]
    # N=1 output matmul replaced by a VPU multiply + lane reduction.
    s = (z1 * w2r_ref[...]).reshape(T, BP, H2)   # leading-dim split: no relayout
    out_ref[...] = jnp.sum(s, axis=-1) + bo2_ref[...]   # dense [T, BP] store


def _pallas_lstm_mlp(x_flat, mask_tb1, kp, T, BP):
    H = kp["whh0"].shape[0]
    ins = [x_flat, mask_tb1,
           kp["wih0"], kp["b0"], kp["whh0"],
           kp["wih1"], kp["whh1"], kp["b1"],
           kp["w1"], kp["bo1"], kp["w2r"], kp["bo2"]]
    vmem = pl.BlockSpec(memory_space=pltpu.MemorySpace.VMEM)
    kernel = functools.partial(_lstm_eta_kernel, T=T, BP=BP, H=H)
    return pl.pallas_call(
        kernel,
        out_shape=jax.ShapeDtypeStruct((T, BP), jnp.float32),
        in_specs=[vmem] * len(ins),
        out_specs=vmem,
        scratch_shapes=[pltpu.VMEM((T, BP, 4 * H), jnp.float32),  # precomputed x-gates
                        pltpu.VMEM((T, BP, H), jnp.float32)],     # per-step h1 slab
    )(*ins)


# -----------------------------------------------------------------------------
# Full forward (glue: -1 fixup, gather-by-pred_idx, mask build, resort gather).
# -----------------------------------------------------------------------------
@functools.partial(jax.jit, static_argnames=("seq_len",))
def lstm_eta_decoder_forward(kparams, hidden_state, unpick_len, pred_idx, seq_len):
    pred_idx = jnp.where(pred_idx == -1, seq_len - 1, pred_idx).astype(jnp.int32)
    sorted_state = jnp.take_along_axis(hidden_state, pred_idx[..., None], axis=1)
    B, T, D = sorted_state.shape
    BP = ((B + 7) // 8) * 8                       # pad batch to fill sublanes

    # pack_padded_sequence / pad_packed_sequence / F.pad == zero-mask t >= len[b]
    mask = (jnp.arange(T, dtype=jnp.int32)[None, :]
            < unpick_len[:, None].astype(jnp.int32)).astype(jnp.float32)   # [B, T]

    x_tbd = jnp.transpose(sorted_state, (1, 0, 2)).astype(jnp.float32)     # [T, B, D]
    x_tbd = jnp.pad(x_tbd, ((0, 0), (0, BP - B), (0, 0)))                  # [T, BP, D]
    x_flat = x_tbd.reshape(T * BP, D)

    mask_tb = jnp.pad(jnp.transpose(mask, (1, 0)), ((0, 0), (0, BP - B)))  # [T, BP]
    mask_tb1 = mask_tb[..., None]                                          # [T, BP, 1]

    out_tb = _pallas_lstm_mlp(x_flat, mask_tb1, kparams, T, BP)            # [T, BP]
    pred_eta = jnp.transpose(out_tb[:, :B], (1, 0))                        # [B, T]

    resort_index = jnp.argsort(pred_idx, axis=1)
    return jnp.take_along_axis(pred_eta, resort_index, axis=1)


# -----------------------------------------------------------------------------
# Pure-JAX reference (same math, no Pallas, no padding) for correctness check.
# -----------------------------------------------------------------------------
def reference_forward(params, hidden_state, unpick_len, pred_idx, seq_len):
    pred_idx = jnp.where(pred_idx == -1, seq_len - 1, pred_idx).astype(jnp.int32)
    sorted_state = jnp.take_along_axis(hidden_state, pred_idx[..., None], axis=1)
    B, T, _ = sorted_state.shape
    H = params["whh0_t"].shape[0]

    def cell(x, h, c, wih_t, whh_t, b):
        g = x @ wih_t + h @ whh_t + b
        i, f, gg, o = jnp.split(g, 4, axis=-1)
        i = jax.nn.sigmoid(i)
        f = jax.nn.sigmoid(f)
        o = jax.nn.sigmoid(o)
        gg = jnp.tanh(gg)
        c = f * c + i * gg
        h = o * jnp.tanh(c)
        return h, c

    h0 = c0 = h1 = c1 = jnp.zeros((B, H), jnp.float32)
    outs = []
    for t in range(T):
        h0, c0 = cell(sorted_state[:, t], h0, c0,
                      params["wih0_t"], params["whh0_t"], params["b0"])
        h1, c1 = cell(h0, h1, c1,
                      params["wih1_t"], params["whh1_t"], params["b1"])
        outs.append(h1)
    hs = jnp.stack(outs, axis=1)                                           # [B, T, H]
    mask = (jnp.arange(T)[None, :] < unpick_len[:, None]).astype(jnp.float32)
    hs = hs * mask[..., None]
    z = jnp.maximum(hs @ params["w1_t"] + params["bo1"], 0.0)
    eta = (z @ params["w2_t"] + params["bo2"])[..., 0]                     # [B, T]
    resort_index = jnp.argsort(pred_idx, axis=1)
    return jnp.take_along_axis(eta, resort_index, axis=1)


# -----------------------------------------------------------------------------
# Parameter init (PyTorch-style uniform) + kernel-layout preparation.
# -----------------------------------------------------------------------------
def init_params(key, state_size, hidden_size):
    H = hidden_size
    k = 1.0 / jnp.sqrt(H)
    keys = jax.random.split(key, 12)

    def u(kk, shape):
        return jax.random.uniform(kk, shape, jnp.float32, -k, k)

    return {
        # layer 0 (transposed to [in, 4H]); biases combined (b_ih + b_hh)
        "wih0_t": u(keys[0], (state_size, 4 * H)),
        "whh0_t": u(keys[1], (H, 4 * H)),
        "b0":     u(keys[2], (1, 4 * H)) + u(keys[3], (1, 4 * H)),
        # layer 1
        "wih1_t": u(keys[4], (H, 4 * H)),
        "whh1_t": u(keys[5], (H, 4 * H)),
        "b1":     u(keys[6], (1, 4 * H)) + u(keys[7], (1, 4 * H)),
        # output MLP: Linear(H, H//2) -> ReLU -> Linear(H//2, 1)
        "w1_t":   u(keys[8], (H, H // 2)),
        "bo1":    u(keys[9], (1, H // 2)),
        "w2_t":   u(keys[10], (H // 2, 1)),
        "bo2":    u(keys[11], (1, 1)),
    }


def prepare_kernel_params(params):
    """Kernel layout: no gate padding (4H == 128 lanes already); w2 as a row."""
    return {
        "wih0": params["wih0_t"], "b0": params["b0"], "whh0": params["whh0_t"],
        "wih1": params["wih1_t"], "whh1": params["whh1_t"], "b1": params["b1"],
        "w1": params["w1_t"], "bo1": params["bo1"],
        "w2r": jnp.transpose(params["w2_t"]),     # [1, H//2] for the VPU reduction
        "bo2": params["bo2"],
    }


if __name__ == "__main__":
    B, SEQ_LEN, STATE_SIZE, HIDDEN = 2, 8, 16, 32

    key = jax.random.PRNGKey(0)
    k_param, k_state, k_perm = jax.random.split(key, 3)

    params = init_params(k_param, STATE_SIZE, HIDDEN)
    kparams = prepare_kernel_params(params)

    hidden_state = jax.random.normal(k_state, (B, SEQ_LEN, STATE_SIZE), jnp.float32)
    unpick_len = jnp.array([SEQ_LEN, 5], dtype=jnp.int32)     # per-sample valid lengths
    pred_idx = jnp.stack(
        [jax.random.permutation(kk, SEQ_LEN) for kk in jax.random.split(k_perm, B)]
    ).astype(jnp.int32)                                       # [B, SEQ_LEN] permutations

    out = lstm_eta_decoder_forward(kparams, hidden_state, unpick_len, pred_idx, SEQ_LEN)
    out = jax.block_until_ready(out)

    ref = reference_forward(params, hidden_state, unpick_len, pred_idx, SEQ_LEN)
    assert out.shape == (B, SEQ_LEN), out.shape
    assert jnp.allclose(out, ref, rtol=1e-4, atol=1e-4), (out, ref)

    print("KERNEL_OK")
</pallas_src>

<mosaic_0001>
module attributes {stable_mosaic.version = 11 : i64} {
  func.func @_lstm_eta_kernel(%arg0: memref<64x16xf32, #tpu.memory_space<vmem>>, %arg1: memref<8x8x1xf32, #tpu.memory_space<vmem>>, %arg2: memref<16x128xf32, #tpu.memory_space<vmem>>, %arg3: memref<1x128xf32, #tpu.memory_space<vmem>>, %arg4: memref<32x128xf32, #tpu.memory_space<vmem>>, %arg5: memref<32x128xf32, #tpu.memory_space<vmem>>, %arg6: memref<32x128xf32, #tpu.memory_space<vmem>>, %arg7: memref<1x128xf32, #tpu.memory_space<vmem>>, %arg8: memref<32x16xf32, #tpu.memory_space<vmem>>, %arg9: memref<1x16xf32, #tpu.memory_space<vmem>>, %arg10: memref<1x16xf32, #tpu.memory_space<vmem>>, %arg11: memref<1x1xf32, #tpu.memory_space<vmem>>, %arg12: memref<8x8xf32, #tpu.memory_space<vmem>>, %arg13: memref<8x8x128xf32, #tpu.memory_space<vmem>>, %arg14: memref<8x8x32xf32, #tpu.memory_space<vmem>>) attributes {dimension_semantics = [], scalar_prefetch = 0 : i64, scratch_operands = 2 : i64, tpu.core_type = #tpu.core_type<tc>} {
    %c0 = arith.constant 0 : index
    %c0_0 = arith.constant 0 : index
    %0 = vector.load %arg0[%c0, %c0_0] : memref<64x16xf32, #tpu.memory_space<vmem>>, vector<64x16xf32>
    %c0_1 = arith.constant 0 : index
    %c0_2 = arith.constant 0 : index
    %1 = vector.load %arg2[%c0_1, %c0_2] : memref<16x128xf32, #tpu.memory_space<vmem>>, vector<16x128xf32>
    %cst = arith.constant dense<0.000000e+00> : vector<64x128xf32>
    %2 = tpu.matmul %0, %1, %cst {dimension_numbers = #tpu.dot_dimension_numbers<[1], [0], [0], [1], [0, 0, 1, 1], [], []>} : vector<64x16xf32>, vector<16x128xf32>, vector<64x128xf32> -> vector<64x128xf32>
    %c0_3 = arith.constant 0 : index
    %c0_4 = arith.constant 0 : index
    %3 = vector.load %arg3[%c0_3, %c0_4] : memref<1x128xf32, #tpu.memory_space<vmem>>, vector<1x128xf32>
    %4 = vector.broadcast %3 : vector<1x128xf32> to vector<64x128xf32>
    %5 = arith.addf %2, %4 : vector<64x128xf32>
    %6 = vector.shape_cast %5 : vector<64x128xf32> to vector<8x8x128xf32>
    %c0_5 = arith.constant 0 : index
    %c0_6 = arith.constant 0 : index
    %c0_7 = arith.constant 0 : index
    %7 = vector.load %arg13[%c0_5, %c0_6, %c0_7] : memref<8x8x128xf32, #tpu.memory_space<vmem>>, vector<8x8x128xf32>
    tpu.vector_store %arg13[%c0_5, %c0_6, %c0_7], %6 {strides = array<i32>} : memref<8x8x128xf32, #tpu.memory_space<vmem>>, vector<8x8x128xf32>,
    %c0_8 = arith.constant 0 : index
    %c0_9 = arith.constant 0 : index
    %8 = vector.load %arg4[%c0_8, %c0_9] : memref<32x128xf32, #tpu.memory_space<vmem>>, vector<32x128xf32>
    %c0_10 = arith.constant 0 : index
    %c0_11 = arith.constant 0 : index
    %9 = vector.load %arg5[%c0_10, %c0_11] : memref<32x128xf32, #tpu.memory_space<vmem>>, vector<32x128xf32>
    %c0_12 = arith.constant 0 : index
    %c0_13 = arith.constant 0 : index
    %10 = vector.load %arg6[%c0_12, %c0_13] : memref<32x128xf32, #tpu.memory_space<vmem>>, vector<32x128xf32>
    %c0_14 = arith.constant 0 : index
    %c0_15 = arith.constant 0 : index
    %11 = vector.load %arg7[%c0_14, %c0_15] : memref<1x128xf32, #tpu.memory_space<vmem>>, vector<1x128xf32>
    %12 = vector.shape_cast %11 : vector<1x128xf32> to vector<1x128xf32>
    %13 = vector.broadcast %12 : vector<1x128xf32> to vector<8x128xf32>
    %cst_16 = arith.constant 0.000000e+00 : f32
    %14 = vector.broadcast %cst_16 : f32 to vector<8x32xf32>
    %c0_i32 = arith.constant 0 : i32
    %cst_17 = arith.constant dense<0.000000e+00> : vector<8x128xf32>
    %15 = tpu.matmul %14, %10, %cst_17 {dimension_numbers = #tpu.dot_dimension_numbers<[1], [0], [0], [1], [0, 0, 1, 1], [], []>} : vector<8x32xf32>, vector<32x128xf32>, vector<8x128xf32> -> vector<8x128xf32>
    %16 = arith.addf %15, %13 : vector<8x128xf32>
    %17 = arith.index_cast %c0_i32 : i32 to index
    %c0_18 = arith.constant 0 : index
    %c0_19 = arith.constant 0 : index
    %18 = vector.load %arg13[%17, %c0_18, %c0_19] : memref<8x8x128xf32, #tpu.memory_space<vmem>>, vector<1x8x128xf32>
    %19 = vector.shape_cast %18 : vector<1x8x128xf32> to vector<8x128xf32>
    %cst_20 = arith.constant dense<0.000000e+00> : vector<8x128xf32>
    %20 = tpu.matmul %14, %8, %cst_20 {dimension_numbers = #tpu.dot_dimension_numbers<[1], [0], [0], [1], [0, 0, 1, 1], [], []>} : vector<8x32xf32>, vector<32x128xf32>, vector<8x128xf32> -> vector<8x128xf32>
    %21 = arith.addf %19, %20 : vector<8x128xf32>
    %cst_21 = arith.constant 5.000000e-01 : f32
    %22 = vector.broadcast %cst_21 : f32 to vector<8x128xf32>
    %23 = arith.mulf %22, %21 : vector<8x128xf32>
    %24 = math.tanh %23 : vector<8x128xf32>
    %cst_22 = arith.constant 1.000000e+00 : f32
    %25 = vector.broadcast %cst_22 : f32 to vector<8x128xf32>
    %26 = arith.addf %24, %25 : vector<8x128xf32>
    %cst_23 = arith.constant 5.000000e-01 : f32
    %27 = vector.broadcast %cst_23 : f32 to vector<8x128xf32>
    %28 = arith.mulf %27, %26 : vector<8x128xf32>
    %29 = math.tanh %21 : vector<8x128xf32>
    %30 = vector.extract_strided_slice %28 {offsets = [0, 0], sizes = [8, 32], strides = [1, 1]} : vector<8x128xf32> to vector<8x32xf32>
    %31 = vector.extract_strided_slice %28 {offsets = [0, 32], sizes = [8, 32], strides = [1, 1]} : vector<8x128xf32> to vector<8x32xf32>
    %32 = vector.extract_strided_slice %29 {offsets = [0, 64], sizes = [8, 32], strides = [1, 1]} : vector<8x128xf32> to vector<8x32xf32>
    %33 = vector.extract_strided_slice %28 {offsets = [0, 96], sizes = [8, 32], strides = [1, 1]} : vector<8x128xf32> to vector<8x32xf32>
    %34 = arith.mulf %31, %14 : vector<8x32xf32>
    %35 = arith.mulf %30, %32 : vector<8x32xf32>
    %36 = arith.addf %34, %35 : vector<8x32xf32>
    %37 = math.tanh %36 : vector<8x32xf32>
    %38 = arith.mulf %33, %37 : vector<8x32xf32>
    %cst_24 = arith.constant dense<0.000000e+00> : vector<8x128xf32>
    %39 = tpu.matmul %38, %9, %cst_24 {dimension_numbers = #tpu.dot_dimension_numbers<[1], [0], [0], [1], [0, 0, 1, 1], [], []>} : vector<8x32xf32>, vector<32x128xf32>, vector<8x128xf32> -> vector<8x128xf32>
    %40 = arith.addf %39, %16 : vector<8x128xf32>
    %cst_25 = arith.constant 5.000000e-01 : f32
    %41 = vector.broadcast %cst_25 : f32 to vector<8x128xf32>
    %42 = arith.mulf %41, %40 : vector<8x128xf32>
    %43 = math.tanh %42 : vector<8x128xf32>
    %cst_26 = arith.constant 1.000000e+00 : f32
    %44 = vector.broadcast %cst_26 : f32 to vector<8x128xf32>
    %45 = arith.addf %43, %44 : vector<8x128xf32>
    %cst_27 = arith.constant 5.000000e-01 : f32
    %46 = vector.broadcast %cst_27 : f32 to vector<8x128xf32>
    %47 = arith.mulf %46, %45 : vector<8x128xf32>
    %48 = math.tanh %40 : vector<8x128xf32>
    %49 = vector.extract_strided_slice %47 {offsets = [0, 0], sizes = [8, 32], strides = [1, 1]} : vector<8x128xf32> to vector<8x32xf32>
    %50 = vector.extract_strided_slice %47 {offsets = [0, 32], sizes = [8, 32], strides = [1, 1]} : vector<8x128xf32> to vector<8x32xf32>
    %51 = vector.extract_strided_slice %48 {offsets = [0, 64], sizes = [8, 32], strides = [1, 1]} : vector<8x128xf32> to vector<8x32xf32>
    %52 = vector.extract_strided_slice %47 {offsets = [0, 96], sizes = [8, 32], strides = [1, 1]} : vector<8x128xf32> to vector<8x32xf32>
    %53 = arith.mulf %50, %14 : vector<8x32xf32>
    %54 = arith.mulf %49, %51 : vector<8x32xf32>
    %55 = arith.addf %53, %54 : vector<8x32xf32>
    %56 = math.tanh %55 : vector<8x32xf32>
    %57 = arith.mulf %52, %56 : vector<8x32xf32>
    %58 = arith.index_cast %c0_i32 : i32 to index
    %c0_28 = arith.constant 0 : index
    %c0_29 = arith.constant 0 : index
    %59 = vector.load %arg14[%58, %c0_28, %c0_29] : memref<8x8x32xf32, #tpu.memory_space<vmem>>, vector<1x8x32xf32>
    %60 = vector.shape_cast %59 : vector<1x8x32xf32> to vector<8x32xf32>
    %61 = vector.shape_cast %57 : vector<8x32xf32> to vector<1x8x32xf32>
    tpu.vector_store %arg14[%58, %c0_28, %c0_29], %61 {strides = array<i32>} : memref<8x8x32xf32, #tpu.memory_space<vmem>>, vector<1x8x32xf32>,
    %c1_i32 = arith.constant 1 : i32
    %cst_30 = arith.constant dense<0.000000e+00> : vector<8x128xf32>
    %62 = tpu.matmul %57, %10, %cst_30 {dimension_numbers = #tpu.dot_dimension_numbers<[1], [0], [0], [1], [0, 0, 1, 1], [], []>} : vector<8x32xf32>, vector<32x128xf32>, vector<8x128xf32> -> vector<8x128xf32>
    %63 = arith.addf %62, %13 : vector<8x128xf32>
    %64 = arith.index_cast %c1_i32 : i32 to index
    %c0_31 = arith.constant 0 : index
    %c0_32 = arith.constant 0 : index
    %65 = vector.load %arg13[%64, %c0_31, %c0_32] : memref<8x8x128xf32, #tpu.memory_space<vmem>>, vector<1x8x128xf32>
    %66 = vector.shape_cast %65 : vector<1x8x128xf32> to vector<8x128xf32>
    %cst_33 = arith.constant dense<0.000000e+00> : vector<8x128xf32>
    %67 = tpu.matmul %38, %8, %cst_33 {dimension_numbers = #tpu.dot_dimension_numbers<[1], [0], [0], [1], [0, 0, 1, 1], [], []>} : vector<8x32xf32>, vector<32x128xf32>, vector<8x128xf32> -> vector<8x128xf32>
    %68 = arith.addf %66, %67 : vector<8x128xf32>
    %cst_34 = arith.constant 5.000000e-01 : f32
    %69 = vector.broadcast %cst_34 : f32 to vector<8x128xf32>
    %70 = arith.mulf %69, %68 : vector<8x128xf32>
    %71 = math.tanh %70 : vector<8x128xf32>
    %cst_35 = arith.constant 1.000000e+00 : f32
    %72 = vector.broadcast %cst_35 : f32 to vector<8x128xf32>
    %73 = arith.addf %71, %72 : vector<8x128xf32>
    %cst_36 = arith.constant 5.000000e-01 : f32
    %74 = vector.broadcast %cst_36 : f32 to vector<8x128xf32>
    %75 = arith.mulf %74, %73 : vector<8x128xf32>
    %76 = math.tanh %68 : vector<8x128xf32>
    %77 = vector.extract_strided_slice %75 {offsets = [0, 0], sizes = [8, 32], strides = [1, 1]} : vector<8x128xf32> to vector<8x32xf32>
    %78 = vector.extract_strided_slice %75 {offsets = [0, 32], sizes = [8, 32], strides = [1, 1]} : vector<8x128xf32> to vector<8x32xf32>
    %79 = vector.extract_strided_slice %76 {offsets = [0, 64], sizes = [8, 32], strides = [1, 1]} : vector<8x128xf32> to vector<8x32xf32>
    %80 = vector.extract_strided_slice %75 {offsets = [0, 96], sizes = [8, 32], strides = [1, 1]} : vector<8x128xf32> to vector<8x32xf32>
    %81 = arith.mulf %78, %36 : vector<8x32xf32>
    %82 = arith.mulf %77, %79 : vector<8x32xf32>
    %83 = arith.addf %81, %82 : vector<8x32xf32>
    %84 = math.tanh %83 : vector<8x32xf32>
    %85 = arith.mulf %80, %84 : vector<8x32xf32>
    %cst_37 = arith.constant dense<0.000000e+00> : vector<8x128xf32>
    %86 = tpu.matmul %85, %9, %cst_37 {dimension_numbers = #tpu.dot_dimension_numbers<[1], [0], [0], [1], [0, 0, 1, 1], [], []>} : vector<8x32xf32>, vector<32x128xf32>, vector<8x128xf32> -> vector<8x128xf32>
    %87 = arith.addf %86, %63 : vector<8x128xf32>
    %cst_38 = arith.constant 5.000000e-01 : f32
    %88 = vector.broadcast %cst_38 : f32 to vector<8x128xf32>
    %89 = arith.mulf %88, %87 : vector<8x128xf32>
    %90 = math.tanh %89 : vector<8x128xf32>
    %cst_39 = arith.constant 1.000000e+00 : f32
    %91 = vector.broadcast %cst_39 : f32 to vector<8x128xf32>
    %92 = arith.addf %90, %91 : vector<8x128xf32>
    %cst_40 = arith.constant 5.000000e-01 : f32
    %93 = vector.broadcast %cst_40 : f32 to vector<8x128xf32>
    %94 = arith.mulf %93, %92 : vector<8x128xf32>
    %95 = math.tanh %87 : vector<8x128xf32>
    %96 = vector.extract_strided_slice %94 {offsets = [0, 0], sizes = [8, 32], strides = [1, 1]} : vector<8x128xf32> to vector<8x32xf32>
    %97 = vector.extract_strided_slice %94 {offsets = [0, 32], sizes = [8, 32], strides = [1, 1]} : vector<8x128xf32> to vector<8x32xf32>
    %98 = vector.extract_strided_slice %95 {offsets = [0, 64], sizes = [8, 32], strides = [1, 1]} : vector<8x128xf32> to vector<8x32xf32>
    %99 = vector.extract_strided_slice %94 {offsets = [0, 96], sizes = [8, 32], strides = [1, 1]} : vector<8x128xf32> to vector<8x32xf32>
    %100 = arith.mulf %97, %55 : vector<8x32xf32>
    %101 = arith.mulf %96, %98 : vector<8x32xf32>
    %102 = arith.addf %100, %101 : vector<8x32xf32>
    %103 = math.tanh %102 : vector<8x32xf32>
    %104 = arith.mulf %99, %103 : vector<8x32xf32>
    %105 = arith.index_cast %c1_i32 : i32 to index
    %c0_41 = arith.constant 0 : index
    %c0_42 = arith.constant 0 : index
    %106 = vector.load %arg14[%105, %c0_41, %c0_42] : memref<8x8x32xf32, #tpu.memory_space<vmem>>, vector<1x8x32xf32>
    %107 = vector.shape_cast %106 : vector<1x8x32xf32> to vector<8x32xf32>
    %108 = vector.shape_cast %104 : vector<8x32xf32> to vector<1x8x32xf32>
    tpu.vector_store %arg14[%105, %c0_41, %c0_42], %108 {strides = array<i32>} : memref<8x8x32xf32, #tpu.memory_space<vmem>>, vector<1x8x32xf32>,
    %c2_i32 = arith.constant 2 : i32
    %cst_43 = arith.constant dense<0.000000e+00> : vector<8x128xf32>
    %109 = tpu.matmul %104, %10, %cst_43 {dimension_numbers = #tpu.dot_dimension_numbers<[1], [0], [0], [1], [0, 0, 1, 1], [], []>} : vector<8x32xf32>, vector<32x128xf32>, vector<8x128xf32> -> vector<8x128xf32>
    %110 = arith.addf %109, %13 : vector<8x128xf32>
    %111 = arith.index_cast %c2_i32 : i32 to index
    %c0_44 = arith.constant 0 : index
    %c0_45 = arith.constant 0 : index
    %112 = vector.load %arg13[%111, %c0_44, %c0_45] : memref<8x8x128xf32, #tpu.memory_space<vmem>>, vector<1x8x128xf32>
    %113 = vector.shape_cast %112 : vector<1x8x128xf32> to vector<8x128xf32>
    %cst_46 = arith.constant dense<0.000000e+00> : vector<8x128xf32>
    %114 = tpu.matmul %85, %8, %cst_46 {dimension_numbers = #tpu.dot_dimension_numbers<[1], [0], [0], [1], [0, 0, 1, 1], [], []>} : vector<8x32xf32>, vector<32x128xf32>, vector<8x128xf32> -> vector<8x128xf32>
    %115 = arith.addf %113, %114 : vector<8x128xf32>
    %cst_47 = arith.constant 5.000000e-01 : f32
    %116 = vector.broadcast %cst_47 : f32 to vector<8x128xf32>
    %117 = arith.mulf %116, %115 : vector<8x128xf32>
    %118 = math.tanh %117 : vector<8x128xf32>
    %cst_48 = arith.constant 1.000000e+00 : f32
    %119 = vector.broadcast %cst_48 : f32 to vector<8x128xf32>
    %120 = arith.addf %118, %119 : vector<8x128xf32>
    %cst_49 = arith.constant 5.000000e-01 : f32
    %121 = vector.broadcast %cst_49 : f32 to vector<8x128xf32>
    %122 = arith.mulf %121, %120 : vector<8x128xf32>
    %123 = math.tanh %115 : vector<8x128xf32>
    %124 = vector.extract_strided_slice %122 {offsets = [0, 0], sizes = [8, 32], strides = [1, 1]} : vector<8x128xf32> to vector<8x32xf32>
    %125 = vector.extract_strided_slice %122 {offsets = [0, 32], sizes = [8, 32], strides = [1, 1]} : vector<8x128xf32> to vector<8x32xf32>
    %126 = vector.extract_strided_slice %123 {offsets = [0, 64], sizes = [8, 32], strides = [1, 1]} : vector<8x128xf32> to vector<8x32xf32>
    %127 = vector.extract_strided_slice %122 {offsets = [0, 96], sizes = [8, 32], strides = [1, 1]} : vector<8x128xf32> to vector<8x32xf32>
    %128 = arith.mulf %125, %83 : vector<8x32xf32>
    %129 = arith.mulf %124, %126 : vector<8x32xf32>
    %130 = arith.addf %128, %129 : vector<8x32xf32>
    %131 = math.tanh %130 : vector<8x32xf32>
    %132 = arith.mulf %127, %131 : vector<8x32xf32>
    %cst_50 = arith.constant dense<0.000000e+00> : vector<8x128xf32>
    %133 = tpu.matmul %132, %9, %cst_50 {dimension_numbers = #tpu.dot_dimension_numbers<[1], [0], [0], [1], [0, 0, 1, 1], [], []>} : vector<8x32xf32>, vector<32x128xf32>, vector<8x128xf32> -> vector<8x128xf32>
    %134 = arith.addf %133, %110 : vector<8x128xf32>
    %cst_51 = arith.constant 5.000000e-01 : f32
    %135 = vector.broadcast %cst_51 : f32 to vector<8x128xf32>
    %136 = arith.mulf %135, %134 : vector<8x128xf32>
    %137 = math.tanh %136 : vector<8x128xf32>
    %cst_52 = arith.constant 1.000000e+00 : f32
    %138 = vector.broadcast %cst_52 : f32 to vector<8x128xf32>
    %139 = arith.addf %137, %138 : vector<8x128xf32>
    %cst_53 = arith.constant 5.000000e-01 : f32
    %140 = vector.broadcast %cst_53 : f32 to vector<8x128xf32>
    %141 = arith.mulf %140, %139 : vector<8x128xf32>
    %142 = math.tanh %134 : vector<8x128xf32>
    %143 = vector.extract_strided_slice %141 {offsets = [0, 0], sizes = [8, 32], strides = [1, 1]} : vector<8x128xf32> to vector<8x32xf32>
    %144 = vector.extract_strided_slice %141 {offsets = [0, 32], sizes = [8, 32], strides = [1, 1]} : vector<8x128xf32> to vector<8x32xf32>
    %145 = vector.extract_strided_slice %142 {offsets = [0, 64], sizes = [8, 32], strides = [1, 1]} : vector<8x128xf32> to vector<8x32xf32>
    %146 = vector.extract_strided_slice %141 {offsets = [0, 96], sizes = [8, 32], strides = [1, 1]} : vector<8x128xf32> to vector<8x32xf32>
    %147 = arith.mulf %144, %102 : vector<8x32xf32>
    %148 = arith.mulf %143, %145 : vector<8x32xf32>
    %149 = arith.addf %147, %148 : vector<8x32xf32>
    %150 = math.tanh %149 : vector<8x32xf32>
    %151 = arith.mulf %146, %150 : vector<8x32xf32>
    %152 = arith.index_cast %c2_i32 : i32 to index
    %c0_54 = arith.constant 0 : index
    %c0_55 = arith.constant 0 : index
    %153 = vector.load %arg14[%152, %c0_54, %c0_55] : memref<8x8x32xf32, #tpu.memory_space<vmem>>, vector<1x8x32xf32>
    %154 = vector.shape_cast %153 : vector<1x8x32xf32> to vector<8x32xf32>
    %155 = vector.shape_cast %151 : vector<8x32xf32> to vector<1x8x32xf32>
    tpu.vector_store %arg14[%152, %c0_54, %c0_55], %155 {strides = array<i32>} : memref<8x8x32xf32, #tpu.memory_space<vmem>>, vector<1x8x32xf32>,
    %c3_i32 = arith.constant 3 : i32
    %cst_56 = arith.constant dense<0.000000e+00> : vector<8x128xf32>
    %156 = tpu.matmul %151, %10, %cst_56 {dimension_numbers = #tpu.dot_dimension_numbers<[1], [0], [0], [1], [0, 0, 1, 1], [], []>} : vector<8x32xf32>, vector<32x128xf32>, vector<8x128xf32> -> vector<8x128xf32>
    %157 = arith.addf %156, %13 : vector<8x128xf32>
    %158 = arith.index_cast %c3_i32 : i32 to index
    %c0_57 = arith.constant 0 : index
    %c0_58 = arith.constant 0 : index
    %159 = vector.load %arg13[%158, %c0_57, %c0_58] : memref<8x8x128xf32, #tpu.memory_space<vmem>>, vector<1x8x128xf32>
    %160 = vector.shape_cast %159 : vector<1x8x128xf32> to vector<8x128xf32>
    %cst_59 = arith.constant dense<0.000000e+00> : vector<8x128xf32>
    %161 = tpu.matmul %132, %8, %cst_59 {dimension_numbers = #tpu.dot_dimension_numbers<[1], [0], [0], [1], [0, 0, 1, 1], [], []>} : vector<8x32xf32>, vector<32x128xf32>, vector<8x128xf32> -> vector<8x128xf32>
    %162 = arith.addf %160, %161 : vector<8x128xf32>
    %cst_60 = arith.constant 5.000000e-01 : f32
    %163 = vector.broadcast %cst_60 : f32 to vector<8x128xf32>
    %164 = arith.mulf %163, %162 : vector<8x128xf32>
    %165 = math.tanh %164 : vector<8x128xf32>
    %cst_61 = arith.constant 1.000000e+00 : f32
    %166 = vector.broadcast %cst_61 : f32 to vector<8x128xf32>
    %167 = arith.addf %165, %166 : vector<8x128xf32>
    %cst_62 = arith.constant 5.000000e-01 : f32
    %168 = vector.broadcast %cst_62 : f32 to vector<8x128xf32>
    %169 = arith.mulf %168, %167 : vector<8x128xf32>
    %170 = math.tanh %162 : vector<8x128xf32>
    %171 = vector.extract_strided_slice %169 {offsets = [0, 0], sizes = [8, 32], strides = [1, 1]} : vector<8x128xf32> to vector<8x32xf32>
    %172 = vector.extract_strided_slice %169 {offsets = [0, 32], sizes = [8, 32], strides = [1, 1]} : vector<8x128xf32> to vector<8x32xf32>
    %173 = vector.extract_strided_slice %170 {offsets = [0, 64], sizes = [8, 32], strides = [1, 1]} : vector<8x128xf32> to vector<8x32xf32>
    %174 = vector.extract_strided_slice %169 {offsets = [0, 96], sizes = [8, 32], strides = [1, 1]} : vector<8x128xf32> to vector<8x32xf32>
    %175 = arith.mulf %172, %130 : vector<8x32xf32>
    %176 = arith.mulf %171, %173 : vector<8x32xf32>
    %177 = arith.addf %175, %176 : vector<8x32xf32>
    %178 = math.tanh %177 : vector<8x32xf32>
    %179 = arith.mulf %174, %178 : vector<8x32xf32>
    %cst_63 = arith.constant dense<0.000000e+00> : vector<8x128xf32>
    %180 = tpu.matmul %179, %9, %cst_63 {dimension_numbers = #tpu.dot_dimension_numbers<[1], [0], [0], [1], [0, 0, 1, 1], [], []>} : vector<8x32xf32>, vector<32x128xf32>, vector<8x128xf32> -> vector<8x128xf32>
    %181 = arith.addf %180, %157 : vector<8x128xf32>
    %cst_64 = arith.constant 5.000000e-01 : f32
    %182 = vector.broadcast %cst_64 : f32 to vector<8x128xf32>
    %183 = arith.mulf %182, %181 : vector<8x128xf32>
    %184 = math.tanh %183 : vector<8x128xf32>
    %cst_65 = arith.constant 1.000000e+00 : f32
    %185 = vector.broadcast %cst_65 : f32 to vector<8x128xf32>
    %186 = arith.addf %184, %185 : vector<8x128xf32>
    %cst_66 = arith.constant 5.000000e-01 : f32
    %187 = vector.broadcast %cst_66 : f32 to vector<8x128xf32>
    %188 = arith.mulf %187, %186 : vector<8x128xf32>
    %189 = math.tanh %181 : vector<8x128xf32>
    %190 = vector.extract_strided_slice %188 {offsets = [0, 0], sizes = [8, 32], strides = [1, 1]} : vector<8x128xf32> to vector<8x32xf32>
    %191 = vector.extract_strided_slice %188 {offsets = [0, 32], sizes = [8, 32], strides = [1, 1]} : vector<8x128xf32> to vector<8x32xf32>
    %192 = vector.extract_strided_slice %189 {offsets = [0, 64], sizes = [8, 32], strides = [1, 1]} : vector<8x128xf32> to vector<8x32xf32>
    %193 = vector.extract_strided_slice %188 {offsets = [0, 96], sizes = [8, 32], strides = [1, 1]} : vector<8x128xf32> to vector<8x32xf32>
    %194 = arith.mulf %191, %149 : vector<8x32xf32>
    %195 = arith.mulf %190, %192 : vector<8x32xf32>
    %196 = arith.addf %194, %195 : vector<8x32xf32>
    %197 = math.tanh %196 : vector<8x32xf32>
    %198 = arith.mulf %193, %197 : vector<8x32xf32>
    %199 = arith.index_cast %c3_i32 : i32 to index
    %c0_67 = arith.constant 0 : index
    %c0_68 = arith.constant 0 : index
    %200 = vector.load %arg14[%199, %c0_67, %c0_68] : memref<8x8x32xf32, #tpu.memory_space<vmem>>, vector<1x8x32xf32>
    %201 = vector.shape_cast %200 : vector<1x8x32xf32> to vector<8x32xf32>
    %202 = vector.shape_cast %198 : vector<8x32xf32> to vector<1x8x32xf32>
    tpu.vector_store %arg14[%199, %c0_67, %c0_68], %202 {strides = array<i32>} : memref<8x8x32xf32, #tpu.memory_space<vmem>>, vector<1x8x32xf32>,
    %c4_i32 = arith.constant 4 : i32
    %cst_69 = arith.constant dense<0.000000e+00> : vector<8x128xf32>
    %203 = tpu.matmul %198, %10, %cst_69 {dimension_numbers = #tpu.dot_dimension_numbers<[1], [0], [0], [1], [0, 0, 1, 1], [], []>} : vector<8x32xf32>, vector<32x128xf32>, vector<8x128xf32> -> vector<8x128xf32>
    %204 = arith.addf %203, %13 : vector<8x128xf32>
    %205 = arith.index_cast %c4_i32 : i32 to index
    %c0_70 = arith.constant 0 : index
    %c0_71 = arith.constant 0 : index
    %206 = vector.load %arg13[%205, %c0_70, %c0_71] : memref<8x8x128xf32, #tpu.memory_space<vmem>>, vector<1x8x128xf32>
    %207 = vector.shape_cast %206 : vector<1x8x128xf32> to vector<8x128xf32>
    %cst_72 = arith.constant dense<0.000000e+00> : vector<8x128xf32>
    %208 = tpu.matmul %179, %8, %cst_72 {dimension_numbers = #tpu.dot_dimension_numbers<[1], [0], [0], [1], [0, 0, 1, 1], [], []>} : vector<8x32xf32>, vector<32x128xf32>, vector<8x128xf32> -> vector<8x128xf32>
    %209 = arith.addf %207, %208 : vector<8x128xf32>
    %cst_73 = arith.constant 5.000000e-01 : f32
    %210 = vector.broadcast %cst_73 : f32 to vector<8x128xf32>
    %211 = arith.mulf %210, %209 : vector<8x128xf32>
    %212 = math.tanh %211 : vector<8x128xf32>
    %cst_74 = arith.constant 1.000000e+00 : f32
    %213 = vector.broadcast %cst_74 : f32 to vector<8x128xf32>
    %214 = arith.addf %212, %213 : vector<8x128xf32>
    %cst_75 = arith.constant 5.000000e-01 : f32
    %215 = vector.broadcast %cst_75 : f32 to vector<8x128xf32>
    %216 = arith.mulf %215, %214 : vector<8x128xf32>
    %217 = math.tanh %209 : vector<8x128xf32>
    %218 = vector.extract_strided_slice %216 {offsets = [0, 0], sizes = [8, 32], strides = [1, 1]} : vector<8x128xf32> to vector<8x32xf32>
    %219 = vector.extract_strided_slice %216 {offsets = [0, 32], sizes = [8, 32], strides = [1, 1]} : vector<8x128xf32> to vector<8x32xf32>
    %220 = vector.extract_strided_slice %217 {offsets = [0, 64], sizes = [8, 32], strides = [1, 1]} : vector<8x128xf32> to vector<8x32xf32>
    %221 = vector.extract_strided_slice %216 {offsets = [0, 96], sizes = [8, 32], strides = [1, 1]} : vector<8x128xf32> to vector<8x32xf32>
    %222 = arith.mulf %219, %177 : vector<8x32xf32>
    %223 = arith.mulf %218, %220 : vector<8x32xf32>
    %224 = arith.addf %222, %223 : vector<8x32xf32>
    %225 = math.tanh %224 : vector<8x32xf32>
    %226 = arith.mulf %221, %225 : vector<8x32xf32>
    %cst_76 = arith.constant dense<0.000000e+00> : vector<8x128xf32>
    %227 = tpu.matmul %226, %9, %cst_76 {dimension_numbers = #tpu.dot_dimension_numbers<[1], [0], [0], [1], [0, 0, 1, 1], [], []>} : vector<8x32xf32>, vector<32x128xf32>, vector<8x128xf32> -> vector<8x128xf32>
    %228 = arith.addf %227, %204 : vector<8x128xf32>
    %cst_77 = arith.constant 5.000000e-01 : f32
    %229 = vector.broadcast %cst_77 : f32 to vector<8x128xf32>
    %230 = arith.mulf %229, %228 : vector<8x128xf32>
    %231 = math.tanh %230 : vector<8x128xf32>
    %cst_78 = arith.constant 1.000000e+00 : f32
    %232 = vector.broadcast %cst_78 : f32 to vector<8x128xf32>
    %233 = arith.addf %231, %232 : vector<8x128xf32>
    %cst_79 = arith.constant 5.000000e-01 : f32
    %234 = vector.broadcast %cst_79 : f32 to vector<8x128xf32>
    %235 = arith.mulf %234, %233 : vector<8x128xf32>
    %236 = math.tanh %228 : vector<8x128xf32>
    %237 = vector.extract_strided_slice %235 {offsets = [0, 0], sizes = [8, 32], strides = [1, 1]} : vector<8x128xf32> to vector<8x32xf32>
    %238 = vector.extract_strided_slice %235 {offsets = [0, 32], sizes = [8, 32], strides = [1, 1]} : vector<8x128xf32> to vector<8x32xf32>
    %239 = vector.extract_strided_slice %236 {offsets = [0, 64], sizes = [8, 32], strides = [1, 1]} : vector<8x128xf32> to vector<8x32xf32>
    %240 = vector.extract_strided_slice %235 {offsets = [0, 96], sizes = [8, 32], strides = [1, 1]} : vector<8x128xf32> to vector<8x32xf32>
    %241 = arith.mulf %238, %196 : vector<8x32xf32>
    %242 = arith.mulf %237, %239 : vector<8x32xf32>
    %243 = arith.addf %241, %242 : vector<8x32xf32>
    %244 = math.tanh %243 : vector<8x32xf32>
    %245 = arith.mulf %240, %244 : vector<8x32xf32>
    %246 = arith.index_cast %c4_i32 : i32 to index
    %c0_80 = arith.constant 0 : index
    %c0_81 = arith.constant 0 : index
    %247 = vector.load %arg14[%246, %c0_80, %c0_81] : memref<8x8x32xf32, #tpu.memory_space<vmem>>, vector<1x8x32xf32>
    %248 = vector.shape_cast %247 : vector<1x8x32xf32> to vector<8x32xf32>
    %249 = vector.shape_cast %245 : vector<8x32xf32> to vector<1x8x32xf32>
    tpu.vector_store %arg14[%246, %c0_80, %c0_81], %249 {strides = array<i32>} : memref<8x8x32xf32, #tpu.memory_space<vmem>>, vector<1x8x32xf32>,
    %c5_i32 = arith.constant 5 : i32
    %cst_82 = arith.constant dense<0.000000e+00> : vector<8x128xf32>
    %250 = tpu.matmul %245, %10, %cst_82 {dimension_numbers = #tpu.dot_dimension_numbers<[1], [0], [0], [1], [0, 0, 1, 1], [], []>} : vector<8x32xf32>, vector<32x128xf32>, vector<8x128xf32> -> vector<8x128xf32>
    %251 = arith.addf %250, %13 : vector<8x128xf32>
    %252 = arith.index_cast %c5_i32 : i32 to index
    %c0_83 = arith.constant 0 : index
    %c0_84 = arith.constant 0 : index
    %253 = vector.load %arg13[%252, %c0_83, %c0_84] : memref<8x8x128xf32, #tpu.memory_space<vmem>>, vector<1x8x128xf32>
    %254 = vector.shape_cast %253 : vector<1x8x128xf32> to vector<8x128xf32>
    %cst_85 = arith.constant dense<0.000000e+00> : vector<8x128xf32>
    %255 = tpu.matmul %226, %8, %cst_85 {dimension_numbers = #tpu.dot_dimension_numbers<[1], [0], [0], [1], [0, 0, 1, 1], [], []>} : vector<8x32xf32>, vector<32x128xf32>, vector<8x128xf32> -> vector<8x128xf32>
    %256 = arith.addf %254, %255 : vector<8x128xf32>
    %cst_86 = arith.constant 5.000000e-01 : f32
    %257 = vector.broadcast %cst_86 : f32 to vector<8x128xf32>
    %258 = arith.mulf %257, %256 : vector<8x128xf32>
    %259 = math.tanh %258 : vector<8x128xf32>
    %cst_87 = arith.constant 1.000000e+00 : f32
    %260 = vector.broadcast %cst_87 : f32 to vector<8x128xf32>
    %261 = arith.addf %259, %260 : vector<8x128xf32>
    %cst_88 = arith.constant 5.000000e-01 : f32
    %262 = vector.broadcast %cst_88 : f32 to vector<8x128xf32>
    %263 = arith.mulf %262, %261 : vector<8x128xf32>
    %264 = math.tanh %256 : vector<8x128xf32>
    %265 = vector.extract_strided_slice %263 {offsets = [0, 0], sizes = [8, 32], strides = [1, 1]} : vector<8x128xf32> to vector<8x32xf32>
    %266 = vector.extract_strided_slice %263 {offsets = [0, 32], sizes = [8, 32], strides = [1, 1]} : vector<8x128xf32> to vector<8x32xf32>
    %267 = vector.extract_strided_slice %264 {offsets = [0, 64], sizes = [8, 32], strides = [1, 1]} : vector<8x128xf32> to vector<8x32xf32>
    %268 = vector.extract_strided_slice %263 {offsets = [0, 96], sizes = [8, 32], strides = [1, 1]} : vector<8x128xf32> to vector<8x32xf32>
    %269 = arith.mulf %266, %224 : vector<8x32xf32>
    %270 = arith.mulf %265, %267 : vector<8x32xf32>
    %271 = arith.addf %269, %270 : vector<8x32xf32>
    %272 = math.tanh %271 : vector<8x32xf32>
    %273 = arith.mulf %268, %272 : vector<8x32xf32>
    %cst_89 = arith.constant dense<0.000000e+00> : vector<8x128xf32>
    %274 = tpu.matmul %273, %9, %cst_89 {dimension_numbers = #tpu.dot_dimension_numbers<[1], [0], [0], [1], [0, 0, 1, 1], [], []>} : vector<8x32xf32>, vector<32x128xf32>, vector<8x128xf32> -> vector<8x128xf32>
    %275 = arith.addf %274, %251 : vector<8x128xf32>
    %cst_90 = arith.constant 5.000000e-01 : f32
    %276 = vector.broadcast %cst_90 : f32 to vector<8x128xf32>
    %277 = arith.mulf %276, %275 : vector<8x128xf32>
    %278 = math.tanh %277 : vector<8x128xf32>
    %cst_91 = arith.constant 1.000000e+00 : f32
    %279 = vector.broadcast %cst_91 : f32 to vector<8x128xf32>
    %280 = arith.addf %278, %279 : vector<8x128xf32>
    %cst_92 = arith.constant 5.000000e-01 : f32
    %281 = vector.broadcast %cst_92 : f32 to vector<8x128xf32>
    %282 = arith.mulf %281, %280 : vector<8x128xf32>
    %283 = math.tanh %275 : vector<8x128xf32>
    %284 = vector.extract_strided_slice %282 {offsets = [0, 0], sizes = [8, 32], strides = [1, 1]} : vector<8x128xf32> to vector<8x32xf32>
    %285 = vector.extract_strided_slice %282 {offsets = [0, 32], sizes = [8, 32], strides = [1, 1]} : vector<8x128xf32> to vector<8x32xf32>
    %286 = vector.extract_strided_slice %283 {offsets = [0, 64], sizes = [8, 32], strides = [1, 1]} : vector<8x128xf32> to vector<8x32xf32>
    %287 = vector.extract_strided_slice %282 {offsets = [0, 96], sizes = [8, 32], strides = [1, 1]} : vector<8x128xf32> to vector<8x32xf32>
    %288 = arith.mulf %285, %243 : vector<8x32xf32>
    %289 = arith.mulf %284, %286 : vector<8x32xf32>
    %290 = arith.addf %288, %289 : vector<8x32xf32>
    %291 = math.tanh %290 : vector<8x32xf32>
    %292 = arith.mulf %287, %291 : vector<8x32xf32>
    %293 = arith.index_cast %c5_i32 : i32 to index
    %c0_93 = arith.constant 0 : index
    %c0_94 = arith.constant 0 : index
    %294 = vector.load %arg14[%293, %c0_93, %c0_94] : memref<8x8x32xf32, #tpu.memory_space<vmem>>, vector<1x8x32xf32>
    %295 = vector.shape_cast %294 : vector<1x8x32xf32> to vector<8x32xf32>
    %296 = vector.shape_cast %292 : vector<8x32xf32> to vector<1x8x32xf32>
    tpu.vector_store %arg14[%293, %c0_93, %c0_94], %296 {strides = array<i32>} : memref<8x8x32xf32, #tpu.memory_space<vmem>>, vector<1x8x32xf32>,
    %c6_i32 = arith.constant 6 : i32
    %cst_95 = arith.constant dense<0.000000e+00> : vector<8x128xf32>
    %297 = tpu.matmul %292, %10, %cst_95 {dimension_numbers = #tpu.dot_dimension_numbers<[1], [0], [0], [1], [0, 0, 1, 1], [], []>} : vector<8x32xf32>, vector<32x128xf32>, vector<8x128xf32> -> vector<8x128xf32>
    %298 = arith.addf %297, %13 : vector<8x128xf32>
    %299 = arith.index_cast %c6_i32 : i32 to index
    %c0_96 = arith.constant 0 : index
    %c0_97 = arith.constant 0 : index
    %300 = vector.load %arg13[%299, %c0_96, %c0_97] : memref<8x8x128xf32, #tpu.memory_space<vmem>>, vector<1x8x128xf32>
    %301 = vector.shape_cast %300 : vector<1x8x128xf32> to vector<8x128xf32>
    %cst_98 = arith.constant dense<0.000000e+00> : vector<8x128xf32>
    %302 = tpu.matmul %273, %8, %cst_98 {dimension_numbers = #tpu.dot_dimension_numbers<[1], [0], [0], [1], [0, 0, 1, 1], [], []>} : vector<8x32xf32>, vector<32x128xf32>, vector<8x128xf32> -> vector<8x128xf32>
    %303 = arith.addf %301, %302 : vector<8x128xf32>
    %cst_99 = arith.constant 5.000000e-01 : f32
    %304 = vector.broadcast %cst_99 : f32 to vector<8x128xf32>
    %305 = arith.mulf %304, %303 : vector<8x128xf32>
    %306 = math.tanh %305 : vector<8x128xf32>
    %cst_100 = arith.constant 1.000000e+00 : f32
    %307 = vector.broadcast %cst_100 : f32 to vector<8x128xf32>
    %308 = arith.addf %306, %307 : vector<8x128xf32>
    %cst_101 = arith.constant 5.000000e-01 : f32
    %309 = vector.broadcast %cst_101 : f32 to vector<8x128xf32>
    %310 = arith.mulf %309, %308 : vector<8x128xf32>
    %311 = math.tanh %303 : vector<8x128xf32>
    %312 = vector.extract_strided_slice %310 {offsets = [0, 0], sizes = [8, 32], strides = [1, 1]} : vector<8x128xf32> to vector<8x32xf32>
    %313 = vector.extract_strided_slice %310 {offsets = [0, 32], sizes = [8, 32], strides = [1, 1]} : vector<8x128xf32> to vector<8x32xf32>
    %314 = vector.extract_strided_slice %311 {offsets = [0, 64], sizes = [8, 32], strides = [1, 1]} : vector<8x128xf32> to vector<8x32xf32>
    %315 = vector.extract_strided_slice %310 {offsets = [0, 96], sizes = [8, 32], strides = [1, 1]} : vector<8x128xf32> to vector<8x32xf32>
    %316 = arith.mulf %313, %271 : vector<8x32xf32>
    %317 = arith.mulf %312, %314 : vector<8x32xf32>
    %318 = arith.addf %316, %317 : vector<8x32xf32>
    %319 = math.tanh %318 : vector<8x32xf32>
    %320 = arith.mulf %315, %319 : vector<8x32xf32>
    %cst_102 = arith.constant dense<0.000000e+00> : vector<8x128xf32>
    %321 = tpu.matmul %320, %9, %cst_102 {dimension_numbers = #tpu.dot_dimension_numbers<[1], [0], [0], [1], [0, 0, 1, 1], [], []>} : vector<8x32xf32>, vector<32x128xf32>, vector<8x128xf32> -> vector<8x128xf32>
    %322 = arith.addf %321, %298 : vector<8x128xf32>
    %cst_103 = arith.constant 5.000000e-01 : f32
    %323 = vector.broadcast %cst_103 : f32 to vector<8x128xf32>
    %324 = arith.mulf %323, %322 : vector<8x128xf32>
    %325 = math.tanh %324 : vector<8x128xf32>
    %cst_104 = arith.constant 1.000000e+00 : f32
    %326 = vector.broadcast %cst_104 : f32 to vector<8x128xf32>
    %327 = arith.addf %325, %326 : vector<8x128xf32>
    %cst_105 = arith.constant 5.000000e-01 : f32
    %328 = vector.broadcast %cst_105 : f32 to vector<8x128xf32>
    %329 = arith.mulf %328, %327 : vector<8x128xf32>
    %330 = math.tanh %322 : vector<8x128xf32>
    %331 = vector.extract_strided_slice %329 {offsets = [0, 0], sizes = [8, 32], strides = [1, 1]} : vector<8x128xf32> to vector<8x32xf32>
    %332 = vector.extract_strided_slice %329 {offsets = [0, 32], sizes = [8, 32], strides = [1, 1]} : vector<8x128xf32> to vector<8x32xf32>
    %333 = vector.extract_strided_slice %330 {offsets = [0, 64], sizes = [8, 32], strides = [1, 1]} : vector<8x128xf32> to vector<8x32xf32>
    %334 = vector.extract_strided_slice %329 {offsets = [0, 96], sizes = [8, 32], strides = [1, 1]} : vector<8x128xf32> to vector<8x32xf32>
    %335 = arith.mulf %332, %290 : vector<8x32xf32>
    %336 = arith.mulf %331, %333 : vector<8x32xf32>
    %337 = arith.addf %335, %336 : vector<8x32xf32>
    %338 = math.tanh %337 : vector<8x32xf32>
    %339 = arith.mulf %334, %338 : vector<8x32xf32>
    %340 = arith.index_cast %c6_i32 : i32 to index
    %c0_106 = arith.constant 0 : index
    %c0_107 = arith.constant 0 : index
    %341 = vector.load %arg14[%340, %c0_106, %c0_107] : memref<8x8x32xf32, #tpu.memory_space<vmem>>, vector<1x8x32xf32>
    %342 = vector.shape_cast %341 : vector<1x8x32xf32> to vector<8x32xf32>
    %343 = vector.shape_cast %339 : vector<8x32xf32> to vector<1x8x32xf32>
    tpu.vector_store %arg14[%340, %c0_106, %c0_107], %343 {strides = array<i32>} : memref<8x8x32xf32, #tpu.memory_space<vmem>>, vector<1x8x32xf32>,
    %c7_i32 = arith.constant 7 : i32
    %cst_108 = arith.constant dense<0.000000e+00> : vector<8x128xf32>
    %344 = tpu.matmul %339, %10, %cst_108 {dimension_numbers = #tpu.dot_dimension_numbers<[1], [0], [0], [1], [0, 0, 1, 1], [], []>} : vector<8x32xf32>, vector<32x128xf32>, vector<8x128xf32> -> vector<8x128xf32>
    %345 = arith.addf %344, %13 : vector<8x128xf32>
    %346 = arith.index_cast %c7_i32 : i32 to index
    %c0_109 = arith.constant 0 : index
    %c0_110 = arith.constant 0 : index
    %347 = vector.load %arg13[%346, %c0_109, %c0_110] : memref<8x8x128xf32, #tpu.memory_space<vmem>>, vector<1x8x128xf32>
    %348 = vector.shape_cast %347 : vector<1x8x128xf32> to vector<8x128xf32>
    %cst_111 = arith.constant dense<0.000000e+00> : vector<8x128xf32>
    %349 = tpu.matmul %320, %8, %cst_111 {dimension_numbers = #tpu.dot_dimension_numbers<[1], [0], [0], [1], [0, 0, 1, 1], [], []>} : vector<8x32xf32>, vector<32x128xf32>, vector<8x128xf32> -> vector<8x128xf32>
    %350 = arith.addf %348, %349 : vector<8x128xf32>
    %cst_112 = arith.constant 5.000000e-01 : f32
    %351 = vector.broadcast %cst_112 : f32 to vector<8x128xf32>
    %352 = arith.mulf %351, %350 : vector<8x128xf32>
    %353 = math.tanh %352 : vector<8x128xf32>
    %cst_113 = arith.constant 1.000000e+00 : f32
    %354 = vector.broadcast %cst_113 : f32 to vector<8x128xf32>
    %355 = arith.addf %353, %354 : vector<8x128xf32>
    %cst_114 = arith.constant 5.000000e-01 : f32
    %356 = vector.broadcast %cst_114 : f32 to vector<8x128xf32>
    %357 = arith.mulf %356, %355 : vector<8x128xf32>
    %358 = math.tanh %350 : vector<8x128xf32>
    %359 = vector.extract_strided_slice %357 {offsets = [0, 0], sizes = [8, 32], strides = [1, 1]} : vector<8x128xf32> to vector<8x32xf32>
    %360 = vector.extract_strided_slice %357 {offsets = [0, 32], sizes = [8, 32], strides = [1, 1]} : vector<8x128xf32> to vector<8x32xf32>
    %361 = vector.extract_strided_slice %358 {offsets = [0, 64], sizes = [8, 32], strides = [1, 1]} : vector<8x128xf32> to vector<8x32xf32>
    %362 = vector.extract_strided_slice %357 {offsets = [0, 96], sizes = [8, 32], strides = [1, 1]} : vector<8x128xf32> to vector<8x32xf32>
    %363 = arith.mulf %360, %318 : vector<8x32xf32>
    %364 = arith.mulf %359, %361 : vector<8x32xf32>
    %365 = arith.addf %363, %364 : vector<8x32xf32>
    %366 = math.tanh %365 : vector<8x32xf32>
    %367 = arith.mulf %362, %366 : vector<8x32xf32>
    %cst_115 = arith.constant dense<0.000000e+00> : vector<8x128xf32>
    %368 = tpu.matmul %367, %9, %cst_115 {dimension_numbers = #tpu.dot_dimension_numbers<[1], [0], [0], [1], [0, 0, 1, 1], [], []>} : vector<8x32xf32>, vector<32x128xf32>, vector<8x128xf32> -> vector<8x128xf32>
    %369 = arith.addf %368, %345 : vector<8x128xf32>
    %cst_116 = arith.constant 5.000000e-01 : f32
    %370 = vector.broadcast %cst_116 : f32 to vector<8x128xf32>
    %371 = arith.mulf %370, %369 : vector<8x128xf32>
    %372 = math.tanh %371 : vector<8x128xf32>
    %cst_117 = arith.constant 1.000000e+00 : f32
    %373 = vector.broadcast %cst_117 : f32 to vector<8x128xf32>
    %374 = arith.addf %372, %373 : vector<8x128xf32>
    %cst_118 = arith.constant 5.000000e-01 : f32
    %375 = vector.broadcast %cst_118 : f32 to vector<8x128xf32>
    %376 = arith.mulf %375, %374 : vector<8x128xf32>
    %377 = math.tanh %369 : vector<8x128xf32>
    %378 = vector.extract_strided_slice %376 {offsets = [0, 0], sizes = [8, 32], strides = [1, 1]} : vector<8x128xf32> to vector<8x32xf32>
    %379 = vector.extract_strided_slice %376 {offsets = [0, 32], sizes = [8, 32], strides = [1, 1]} : vector<8x128xf32> to vector<8x32xf32>
    %380 = vector.extract_strided_slice %377 {offsets = [0, 64], sizes = [8, 32], strides = [1, 1]} : vector<8x128xf32> to vector<8x32xf32>
    %381 = vector.extract_strided_slice %376 {offsets = [0, 96], sizes = [8, 32], strides = [1, 1]} : vector<8x128xf32> to vector<8x32xf32>
    %382 = arith.mulf %379, %337 : vector<8x32xf32>
    %383 = arith.mulf %378, %380 : vector<8x32xf32>
    %384 = arith.addf %382, %383 : vector<8x32xf32>
    %385 = math.tanh %384 : vector<8x32xf32>
    %386 = arith.mulf %381, %385 : vector<8x32xf32>
    %387 = arith.index_cast %c7_i32 : i32 to index
    %c0_119 = arith.constant 0 : index
    %c0_120 = arith.constant 0 : index
    %388 = vector.load %arg14[%387, %c0_119, %c0_120] : memref<8x8x32xf32, #tpu.memory_space<vmem>>, vector<1x8x32xf32>
    %389 = vector.shape_cast %388 : vector<1x8x32xf32> to vector<8x32xf32>
    %390 = vector.shape_cast %386 : vector<8x32xf32> to vector<1x8x32xf32>
    tpu.vector_store %arg14[%387, %c0_119, %c0_120], %390 {strides = array<i32>} : memref<8x8x32xf32, #tpu.memory_space<vmem>>, vector<1x8x32xf32>,
    %c8_i32 = arith.constant 8 : i32
    %c0_121 = arith.constant 0 : index
    %c0_122 = arith.constant 0 : index
    %c0_123 = arith.constant 0 : index
    %391 = vector.load %arg14[%c0_121, %c0_122, %c0_123] : memref<8x8x32xf32, #tpu.memory_space<vmem>>, vector<8x8x32xf32>
    %c0_124 = arith.constant 0 : index
    %c0_125 = arith.constant 0 : index
    %c0_126 = arith.constant 0 : index
    %392 = vector.load %arg1[%c0_124, %c0_125, %c0_126] : memref<8x8x1xf32, #tpu.memory_space<vmem>>, vector<8x8x1xf32>
    %393 = vector.broadcast %392 : vector<8x8x1xf32> to vector<8x8x32xf32>
    %394 = arith.mulf %391, %393 : vector<8x8x32xf32>
    %395 = vector.shape_cast %394 : vector<8x8x32xf32> to vector<64x32xf32>
    %c0_127 = arith.constant 0 : index
    %c0_128 = arith.constant 0 : index
    %396 = vector.load %arg8[%c0_127, %c0_128] : memref<32x16xf32, #tpu.memory_space<vmem>>, vector<32x16xf32>
    %cst_129 = arith.constant dense<0.000000e+00> : vector<64x16xf32>
    %397 = tpu.matmul %395, %396, %cst_129 {dimension_numbers = #tpu.dot_dimension_numbers<[1], [0], [0], [1], [0, 0, 1, 1], [], []>} : vector<64x32xf32>, vector<32x16xf32>, vector<64x16xf32> -> vector<64x16xf32>
    %c0_130 = arith.constant 0 : index
    %c0_131 = arith.constant 0 : index
    %398 = vector.load %arg9[%c0_130, %c0_131] : memref<1x16xf32, #tpu.memory_space<vmem>>, vector<1x16xf32>
    %399 = vector.broadcast %398 : vector<1x16xf32> to vector<64x16xf32>
    %400 = arith.addf %397, %399 : vector<64x16xf32>
    %cst_132 = arith.constant 0.000000e+00 : f32
    %401 = vector.broadcast %cst_132 : f32 to vector<64x16xf32>
    %402 = arith.maximumf %400, %401 : vector<64x16xf32>
    %c0_133 = arith.constant 0 : index
    %c0_134 = arith.constant 0 : index
    %403 = vector.load %arg10[%c0_133, %c0_134] : memref<1x16xf32, #tpu.memory_space<vmem>>, vector<1x16xf32>
    %404 = vector.broadcast %403 : vector<1x16xf32> to vector<64x16xf32>
    %405 = arith.mulf %402, %404 : vector<64x16xf32>
    %406 = vector.shape_cast %405 : vector<64x16xf32> to vector<8x8x16xf32>
    %cst_135 = arith.constant dense<0.000000e+00> : vector<8x8xf32>
    %407 = vector.multi_reduction <add>, %406, %cst_135 [2] : vector<8x8x16xf32> to vector<8x8xf32>
    %c0_136 = arith.constant 0 : index
    %c0_137 = arith.constant 0 : index
    %408 = vector.load %arg11[%c0_136, %c0_137] : memref<1x1xf32, #tpu.memory_space<vmem>>, vector<1x1xf32>
    %409 = vector.broadcast %408 : vector<1x1xf32> to vector<8x8xf32>
    %410 = arith.addf %407, %409 : vector<8x8xf32>
    %c0_138 = arith.constant 0 : index
    %c0_139 = arith.constant 0 : index
    %411 = vector.load %arg12[%c0_138, %c0_139] : memref<8x8xf32, #tpu.memory_space<vmem>>, vector<8x8xf32>
    tpu.vector_store %arg12[%c0_138, %c0_139], %410 {strides = array<i32>} : memref<8x8xf32, #tpu.memory_space<vmem>>, vector<8x8xf32>,
    return
  }
}

</mosaic_0001>

<bundles_post_ra>
// kernel: lstm_eta_decoder_forward.1
= control target key start
LH: loop header
LB: loop body
LE: loop exit
PB: predicated region body
PF: predicated region fallthrough
CT: control target
= control target key end

     0   :  { %v3478_v0 = vmov 0.0|0.0   ;;  %vm3479_vm0 = vmmov 0   ;;  %v3480_v4 = vmov 0.0   ;;  %vm60_vm1 = vcmask 130048   ;;  %s3481_s26 = smov 64   ;;  %s3482_s27 = smov 32   ;;  %s4034_s6 = inlined_call_operand.vmem [shape: f32[32,128], index: 6, kind: input, shape index: {}]   ;;  %s4035_s2 = inlined_call_operand.vmem [shape: f32[16,128], index: 2, kind: input, shape index: {}]   ;;  %s4036_s0 = inlined_call_operand.vmem [shape: f32[64,16], index: 0, kind: input, shape index: {}]   ;;  %s4037_s4 = inlined_call_operand.vmem [shape: f32[32,128], index: 4, kind: input, shape index: {}]   ;;  %s4038_s3 = inlined_call_operand.vmem [shape: f32[1,128], index: 3, kind: input, shape index: {}]   ;;  %s4039_s5 = inlined_call_operand.vmem [shape: f32[32,128], index: 5, kind: input, shape index: {}]   ;;  %s4040_s7 = inlined_call_operand.vmem [shape: f32[1,128], index: 7, kind: input, shape index: {}]   ;;  %s4041_s1 = inlined_call_operand.vmem [shape: f32[8,8,1], index: 1, kind: input, shape index: {}]   ;;  %s4042_s8 = inlined_call_operand.vmem [shape: f32[32,16], index: 8, kind: input, shape index: {}]   ;;  %s4043_s9 = inlined_call_operand.vmem [shape: f32[1,16], index: 9, kind: input, shape index: {}]   ;;  %s4044_s11 = inlined_call_operand.<no memory space> [shape: f32[1,1], index: 11, kind: input, shape index: {}]   ;;  %s4045_s10 = inlined_call_operand.vmem [shape: f32[1,16], index: 10, kind: input, shape index: {}]   ;;  %s4046_s12 = inlined_call_operand.vmem [shape: f32[8,8], index: 12, kind: output, shape index: {}]  }
   0x1   :  { %3198 = vmatprep.subr.bf16.mxu1 %v3478_v0  ;;  %v206_v1 = vld [vmem:[%s4034_s6] sm:$0xff]  ;;  %v207_v2 = vld [vmem:[%s4034_s6 + $0x8] sm:$0xff]  ;;  %v208_v3 = vld [vmem:[%s4034_s6 + $0x10] sm:$0xff]  ;;  %2918 = vmatprep.mubr.msk.f32.mxu1 %vm3479_vm0, %v3480_v4  ;;  %vm217_vm2 = vcmask 261120   ;;  %vm2688_vm3 = vcmask 1041409   ;;  %vm2690_vm4 = vcmask 1042434  }
   0x2   :  { %v3561_v5 = vpack.c.bf16 %v207_v2, %v206_v1  ;;  %v209_v6 = vld [vmem:[%s4034_s6 + $0x18] sm:$0xff]  ;;  %v51_v7 = vld [vmem:[%s4035_s2] sm:$0xff]  ;;  %v52_v8 = vld [vmem:[%s4035_s2 + $0x8] sm:$0xff]  ;;  %vm2692_vm5 = vcmask 1043459   ;;  %vm2694_vm6 = vcmask 1044484   ;;  %vm2696_vm7 = vcmask 1045509  }
   0x3   :  { %v3194_v9 = vpack.c.bf16 %v52_v8, %v51_v7  ;;  %v43_v10 = vld [vmem:[%s4036_s0] sm:$0xff]  ;;  %v3576_v11 = vpack.c.bf16 %v209_v6, %v208_v3  ;;  %v199_v13 = vld [vmem:[%s4037_s4 + $0x8] sm:$0xff]  ;;  %v200_v16 = vld [vmem:[%s4037_s4 + $0x10] sm:$0xff]  ;;  %vm2698_vm8 = vcmask 1046534   ;;  %vm2700_vm9 = vcmask 1047559  }
   0x4   :  { %3200 = vmatpush3.bf16.msra.mxu1 %v3561_v5  ;;  %2898 = vmatprep.mubr.msk.f32.mxu0 %vm60_vm1, %v43_v10  ;;  %v198_v12 = vld [vmem:[%s4037_s4] sm:$0xff]  ;;  %v44_v14 = vld [vmem:[%s4036_s0 + $0x8] sm:$0xff]  ;;  %v201_v17 = vld [vmem:[%s4037_s4 + $0x18] sm:$0xff]  ;;  %vm2703_vm10 = vcmask 64512  }
   0x5   :  { %3201 = vmatprep.subr.bf16.mxu1 %v3478_v0  ;;  %3195 = vmatprep.subr.bf16.mxu0 %v3194_v9  ;;  %v3591_v15 = vpack.c.bf16 %v199_v13, %v198_v12  ;;  %v3605_v18 = vpack.c.bf16 %v201_v17, %v200_v16  ;;  %v3622_v21 = vld [vmem:[%s4038_s3] ss:$0 sm:$0xff]  ;;  %v203_v37 = vld [vmem:[%s4039_s5 + $0x8] sm:$0xff]  ;;  %v204_v38 = vld [vmem:[%s4039_s5 + $0x10] sm:$0xff] }
   0x6   :  { %3197 = vmatpush3.bf16.msra.mxu0 %v3194_v9  ;;  %v202_v36 = vld [vmem:[%s4039_s5] sm:$0xff]  ;;  %v205_v40 = vld [vmem:[%s4039_s5 + $0x18] sm:$0xff]  ;;  %v45_v60 = vld [vmem:[%s4036_s0 + $0x10] sm:$0xff] }
   0x7   :  { %3216 = vmatprep.subr.bf16.mxu0 %v3478_v0  ;;  %v3639_v39 = vpack.c.bf16 %v203_v37, %v202_v36  ;;  %v3645_v41 = vpack.c.bf16 %v205_v40, %v204_v38  ;;  %v3662_v46 = vld [vmem:[%s4040_s7] ss:$0 sm:$0xff]  ;;  %v46_v61 = vld [vmem:[%s4036_s0 + $0x18] sm:$0xff]  ;;  %v48_v63 = vld [vmem:[%s4036_s0 + $0x28] sm:$0xff] }
   0x8   :  { %3203 = vmatpush3.bf16.msra.mxu1 %v3576_v11  ;;  %v47_v62 = vld [vmem:[%s4036_s0 + $0x20] sm:$0xff]  ;;  %v49_v1 = vld [vmem:[%s4036_s0 + $0x30] sm:$0xff]  ;;  %v50_v2 = vld [vmem:[%s4036_s0 + $0x38] sm:$0xff] }
   0x9   :  { %3204 = vmatprep.subr.bf16.mxu1 %v3478_v0  ;;  %2899 = vmatmul.mubr.msk.f32.vlgmr.msra.gmra.mrb[0].mxu0 %vm60_vm1, %v44_v14 }
   0xa   :  { %3218 = vmatpush3.bf16.msra.mxu0 %v3561_v5  ;;  %2901 = vmatprep.mubr.msk.f32.mxu0 %vm60_vm1, %v45_v60 }
   0xb   :  { %2919 = vmatmul.mubr.f32.vlgmr.msra.gmra.mrb[0].mxu1 %v3480_v4  ;;  %3219 = vmatprep.subr.bf16.mxu0 %v3478_v0 }
   0xc   :  { %3206 = vmatpush3.bf16.msra.mxu1 %v3591_v15  ;;  %2929 = vmatprep.mubr.msk.f32.mxu1 %vm3479_vm0, %v3480_v4 }
   0xd   :  { %3207 = vmatprep.subr.bf16.mxu1 %v3478_v0  ;;  %2902 = vmatmul.mubr.msk.f32.gmra.mrb[2].mxu0 %vm60_vm1, %v46_v61 }
   0xe   :  { %3221 = vmatpush3.bf16.msra.mxu0 %v3576_v11  ;;  %2904 = vmatprep.mubr.msk.f32.mxu0 %vm60_vm1, %v47_v62 }
   0xf   :  { %3222 = vmatprep.subr.bf16.mxu0 %v3478_v0 }
  0x10   :  { %3209 = vmatpush3.bf16.msra.mxu1 %v3605_v18 }
  0x11   :  { %3210 = vmatprep.subr.bf16.mxu1 %v3478_v0  ;;  %2905 = vmatmul.mubr.msk.f32.gmra.mrb[4].mxu0 %vm60_vm1, %v48_v63 }
  0x12   :  { %2907 = vmatprep.mubr.msk.f32.mxu0 %vm60_vm1, %v49_v1 }
  0x13   :  { %2930 = vmatmul.mubr.f32.vlgmr.msra.gmra.mrb[2].mxu1 %v3480_v4 }
  0x14   :  { %2940 = vmatprep.mubr.msk.f32.mxu1 %vm3479_vm0, %v3480_v4  ;;  %3212 = vmatpush3.bf16.msra.mxu1 %v3639_v39 }
  0x15   :  { %3213 = vmatprep.subr.bf16.mxu1 %v3478_v0  ;;  %2908 = vmatmul.mubr.msk.f32.gmra.mrb[6].mxu0 %vm60_vm1, %v50_v2 }
  0x16   :  { %2951 = vmatprep.mubr.msk.f32.mxu0 %vm3479_vm0, %v3480_v4 }
  0x18   :  { %3215 = vmatpush3.bf16.msra.mxu1 %v3645_v41 }
  0x19   :  { %3234 = vmatprep.subr.bf16.mxu1 %v3478_v0 }
  0xdc   :  { %v3617_v19 = vpop.f32.mrb[0].mxu0 }
  0xdd   :  { %v151_v20 = vpop.f32.mrb[1].mxu0  ;;  %v157_v17 = vadd.f32 %v3617_v19, %v3622_v21 }
  0xde   :  { %v152_v22 = vadd.f32 %v3622_v21, %v151_v20 }
  0xe0   :  { %v3698_v8 = vpop.f32.mrb[2].mxu0 }
  0xe1   :  { %v3700_v9 = vpop.f32.mrb[3].mxu0 }
  0xe4   :  { %v3702_v10 = vpop.f32.mrb[4].mxu0 }
  0xe5   :  { %v3704_v12 = vpop.f32.mrb[5].mxu0 }
  0xe6   :  { %v358_v23 = vpop.f32.mrb[2].mxu1 }
  0xe7   :  { %v362_v24 = vadd.f32 %v358_v23, %v152_v22  ;;  %v2931_v25 = vpop.f32.mrb[3].mxu1 }
  0xe8   :  { %v3706_v13 = vpop.f32.mrb[6].mxu0 }
  0xe9   :  { %3382 = vtanh.f32 %v362_v24  ;;  %v363_v27 = vmul.f32 0.5, %v362_v24  ;;  %v3708_v14 = vpop.f32.mrb[7].mxu0 }
  0xeb   :  { %3384 = vtanh.f32 %v363_v27 }
  0xf3   :  { %v3383_v26 = vpop.eup %3382 }
  0xf4   :  { %370 = vrot.lane.b32.xlu0 %v3383_v26, %s3481_s26 }
  0xf5   :  { %v3385_v28 = vpop.eup %3384 }
  0xf6   :  { %v365_v29 = vadd.f32 1.0, %v3385_v28 }
  0xf8   :  { %v366_v30 = vmul.f32 0.5, %v365_v29 }
  0xfa   :  { %v368_v33 = vmul.f32 0.0, %v366_v30 }
 0x166   :  { %v371_v31 = vpop.permute.xlu0 %370 }
 0x167   :  { %v373_v32 = vmul.f32 %v371_v31, %v366_v30 }
 0x169   :  { %375 = vrot.lane.b32.xlu0 %v373_v32, %s3482_s27 }
 0x1db   :  { %v376_v34 = vpop.permute.xlu0 %375 }
 0x1dc   :  { %v3627_v35 = vadd.f32 %v376_v34, %v368_v33 }
 0x1de   :  { %3386 = vtanh.f32 %v3627_v35 }
 0x1e8   :  { %v3387_v42 = vpop.eup %3386 }
 0x1e9   :  { %381 = vrot.lane.b32.xlu1 %v3387_v42, %s3481_s26 }
 0x25b   :  { %v382_v43 = vpop.permute.xlu1 %381 }
 0x25c   :  { %v384_v44 = vmul.f32 %v382_v43, %v366_v30 }
 0x25e   :  { %386 = vrot.lane.b32.xlu1 %v384_v44, %s3482_s27 }
 0x2d0   :  { %v387_v45 = vpop.permute.xlu1 %386 }
 0x2d1   :  { %2941 = vmatmul.mubr.msk.f32.vlgmr.msra.gmra.mrb[0].mxu1 %vm217_vm2, %v387_v45 }
 0x2d2   :  { %3236 = vmatpush3.bf16.msra.mxu1 %v3561_v5  ;;  %2984 = vmatprep.mubr.msk.f32.mxu1 %vm3479_vm0, %v3480_v4 }
 0x2d3   :  { %3237 = vmatprep.subr.bf16.mxu1 %v3478_v0 }
 0x2d6   :  { %3239 = vmatpush3.bf16.msra.mxu1 %v3576_v11 }
 0x2d7   :  { %3240 = vmatprep.subr.bf16.mxu1 %v3478_v0 }
 0x3a4   :  { %v456_v47 = vpop.f32.mrb[0].mxu1 }
 0x3a5   :  { %v3350_v48 = vadd.f32 %v3662_v46, %v456_v47  ;;  %v2942_v49 = vpop.f32.mrb[1].mxu1 }
 0x3a7   :  { %3388 = vtanh.f32 %v3350_v48  ;;  %v460_v51 = vmul.f32 0.5, %v3350_v48 }
 0x3a9   :  { %3390 = vtanh.f32 %v460_v51 }
 0x3b1   :  { %v3389_v50 = vpop.eup %3388 }
 0x3b2   :  { %467 = vrot.lane.b32.xlu0 %v3389_v50, %s3481_s26 }
 0x3b3   :  { %v3391_v52 = vpop.eup %3390 }
 0x3b4   :  { %v462_v53 = vadd.f32 1.0, %v3391_v52 }
 0x3b6   :  { %v463_v54 = vmul.f32 0.5, %v462_v53 }
 0x3b8   :  { %v465_v57 = vmul.f32 0.0, %v463_v54 }
 0x424   :  { %v468_v55 = vpop.permute.xlu0 %467 }
 0x425   :  { %v470_v56 = vmul.f32 %v468_v55, %v463_v54 }
 0x427   :  { %472 = vrot.lane.b32.xlu1 %v470_v56, %s3482_s27 }
 0x499   :  { %v473_v58 = vpop.permute.xlu1 %472 }
 0x49a   :  { %v3667_v59 = vadd.f32 %v473_v58, %v465_v57  ;;  %v162_v57 = vadd.f32 %v3622_v21, %v3700_v9 }
 0x49c   :  { %3392 = vtanh.f32 %v3667_v59 }
 0x4a6   :  { %v3393_v3 = vpop.eup %3392 }
 0x4a7   :  { %478 = vrot.lane.b32.xlu0 %v3393_v3, %s3481_s26 }
 0x519   :  { %v479_v6 = vpop.permute.xlu0 %478 }
 0x51a   :  { %v481_v7 = vmul.f32 %v479_v6, %v463_v54 }
 0x51c   :  { %483 = vrot.lane.b32.xlu1 %v481_v7, %s3482_s27 }
 0x58e   :  { %v484_v16 = vpop.permute.xlu1 %483 }
 0x58f   :  { %486 = vst.msk [vmem:[#allocation3] sm:$0xff] %vm217_vm2, %v484_v16  ;;  %2952 = vmatmul.mubr.msk.f32.vlgmr.msra.gmra.mrb[8].mxu0 %vm217_vm2, %v484_v16 }
 0x590   :  { %3224 = vmatpush3.bf16.msra.mxu0 %v3591_v15  ;;  %2962 = vmatprep.mubr.msk.f32.mxu0 %vm3479_vm0, %v3480_v4 }
 0x591   :  { %3225 = vmatprep.subr.bf16.mxu0 %v3478_v0 }
 0x594   :  { %3227 = vmatpush3.bf16.msra.mxu0 %v3605_v18 }
 0x595   :  { %3228 = vmatprep.subr.bf16.mxu0 %v3478_v0 }
 0x597   :  { %2963 = vmatmul.mubr.msk.f32.vlgmr.msra.gmra.mrb[10].mxu0 %vm217_vm2, %v387_v45 }
 0x598   :  { %3230 = vmatpush3.bf16.msra.mxu0 %v3639_v39  ;;  %2973 = vmatprep.mubr.msk.f32.mxu0 %vm3479_vm0, %v3480_v4 }
 0x599   :  { %3231 = vmatprep.subr.bf16.mxu0 %v3478_v0 }
 0x59c   :  { %3233 = vmatpush3.bf16.msra.mxu0 %v3645_v41 }
 0x59d   :  { %3252 = vmatprep.subr.bf16.mxu0 %v3478_v0 }
 0x66a   :  { %v627_v20 = vpop.f32.mrb[10].mxu0 }
 0x66b   :  { %v631_v22 = vadd.f32 %v627_v20, %v157_v17  ;;  %v2964_v23 = vpop.f32.mrb[11].mxu0 }
 0x66d   :  { %3394 = vtanh.f32 %v631_v22  ;;  %v632_v25 = vmul.f32 0.5, %v631_v22 }
 0x66f   :  { %3396 = vtanh.f32 %v632_v25 }
 0x677   :  { %v3395_v24 = vpop.eup %3394 }
 0x678   :  { %639 = vrot.lane.b32.xlu0 %v3395_v24, %s3481_s26 }
 0x679   :  { %v3397_v26 = vpop.eup %3396 }
 0x67a   :  { %v634_v27 = vadd.f32 1.0, %v3397_v26 }
 0x67c   :  { %v635_v28 = vmul.f32 0.5, %v634_v27 }
 0x67e   :  { %v637_v31 = vmul.f32 %v635_v28, %v3627_v35 }
 0x6ea   :  { %v640_v29 = vpop.permute.xlu0 %639 }
 0x6eb   :  { %v642_v30 = vmul.f32 %v640_v29, %v635_v28 }
 0x6ed   :  { %644 = vrot.lane.b32.xlu1 %v642_v30, %s3482_s27 }
 0x75f   :  { %v645_v32 = vpop.permute.xlu1 %644 }
 0x760   :  { %v3730_v19 = vadd.f32 %v645_v32, %v637_v31 }
 0x762   :  { %3398 = vtanh.f32 %v3730_v19 }
 0x76c   :  { %v3399_v33 = vpop.eup %3398 }
 0x76d   :  { %650 = vrot.lane.b32.xlu0 %v3399_v33, %s3481_s26 }
 0x7df   :  { %v651_v34 = vpop.permute.xlu0 %650 }
 0x7e0   :  { %v653_v36 = vmul.f32 %v651_v34, %v635_v28 }
 0x7e2   :  { %655 = vrot.lane.b32.xlu1 %v653_v36, %s3482_s27 }
 0x854   :  { %v656_v37 = vpop.permute.xlu1 %655 }
 0x855   :  { %2974 = vmatmul.mubr.msk.f32.vlgmr.msra.gmra.mrb[8].mxu0 %vm217_vm2, %v656_v37 }
 0x856   :  { %3254 = vmatpush3.bf16.msra.mxu0 %v3561_v5  ;;  %3017 = vmatprep.mubr.msk.f32.mxu0 %vm3479_vm0, %v3480_v4 }
 0x857   :  { %3255 = vmatprep.subr.bf16.mxu0 %v3478_v0 }
 0x85a   :  { %3257 = vmatpush3.bf16.msra.mxu0 %v3576_v11 }
 0x85b   :  { %3258 = vmatprep.subr.bf16.mxu0 %v3478_v0 }
 0x928   :  { %v725_v35 = vpop.f32.mrb[8].mxu0 }
 0x929   :  { %v3351_v38 = vadd.f32 %v3662_v46, %v725_v35  ;;  %v2975_v40 = vpop.f32.mrb[9].mxu0 }
 0x92b   :  { %3400 = vtanh.f32 %v3351_v38  ;;  %v729_v43 = vmul.f32 0.5, %v3351_v38 }
 0x92d   :  { %3402 = vtanh.f32 %v729_v43 }
 0x935   :  { %v3401_v42 = vpop.eup %3400 }
 0x936   :  { %736 = vrot.lane.b32.xlu0 %v3401_v42, %s3481_s26  ;;  %v167_v42 = vadd.f32 %v3698_v8, %v3622_v21 }
 0x937   :  { %v3403_v44 = vpop.eup %3402 }
 0x938   :  { %v731_v45 = vadd.f32 1.0, %v3403_v44 }
 0x93a   :  { %v732_v47 = vmul.f32 0.5, %v731_v45 }
 0x93c   :  { %v734_v50 = vmul.f32 %v732_v47, %v3667_v59 }
 0x9a8   :  { %v737_v48 = vpop.permute.xlu0 %736 }
 0x9a9   :  { %v739_v49 = vmul.f32 %v737_v48, %v732_v47 }
 0x9ab   :  { %741 = vrot.lane.b32.xlu1 %v739_v49, %s3482_s27 }
 0xa1d   :  { %v742_v51 = vpop.permute.xlu1 %741 }
 0xa1e   :  { %v3746_v52 = vadd.f32 %v742_v51, %v734_v50 }
 0xa20   :  { %3404 = vtanh.f32 %v3746_v52 }
 0xa2a   :  { %v3405_v53 = vpop.eup %3404 }
 0xa2b   :  { %747 = vrot.lane.b32.xlu0 %v3405_v53, %s3481_s26 }
 0xa9d   :  { %v748_v54 = vpop.permute.xlu0 %747 }
 0xa9e   :  { %v750_v55 = vmul.f32 %v748_v54, %v732_v47 }
 0xaa0   :  { %752 = vrot.lane.b32.xlu1 %v750_v55, %s3482_s27 }
 0xb12   :  { %v753_v56 = vpop.permute.xlu1 %752 }
 0xb13   :  { %756 = vst.msk [vmem:[#allocation3 + $0x8] sm:$0xff] %vm217_vm2, %v753_v56  ;;  %2985 = vmatmul.mubr.msk.f32.vlgmr.msra.gmra.mrb[4].mxu1 %vm217_vm2, %v753_v56 }
 0xb14   :  { %3242 = vmatpush3.bf16.msra.mxu1 %v3591_v15  ;;  %2995 = vmatprep.mubr.msk.f32.mxu1 %vm3479_vm0, %v3480_v4 }
 0xb15   :  { %3243 = vmatprep.subr.bf16.mxu1 %v3478_v0 }
 0xb18   :  { %3245 = vmatpush3.bf16.msra.mxu1 %v3605_v18 }
 0xb19   :  { %3246 = vmatprep.subr.bf16.mxu1 %v3478_v0 }
 0xb1b   :  { %2996 = vmatmul.mubr.msk.f32.vlgmr.msra.gmra.mrb[6].mxu1 %vm217_vm2, %v656_v37 }
 0xb1c   :  { %3248 = vmatpush3.bf16.msra.mxu1 %v3639_v39  ;;  %3006 = vmatprep.mubr.msk.f32.mxu1 %vm3479_vm0, %v3480_v4 }
 0xb1d   :  { %3249 = vmatprep.subr.bf16.mxu1 %v3478_v0 }
 0xb20   :  { %3251 = vmatpush3.bf16.msra.mxu1 %v3645_v41 }
 0xb21   :  { %3270 = vmatprep.subr.bf16.mxu1 %v3478_v0 }
 0xbee   :  { %v897_v58 = vpop.f32.mrb[6].mxu1 }
 0xbef   :  { %v901_v59 = vadd.f32 %v897_v58, %v162_v57  ;;  %v2997_v60 = vpop.f32.mrb[7].mxu1 }
 0xbf1   :  { %3406 = vtanh.f32 %v901_v59  ;;  %v902_v62 = vmul.f32 0.5, %v901_v59 }
 0xbf3   :  { %3408 = vtanh.f32 %v902_v62 }
 0xbfb   :  { %v3407_v61 = vpop.eup %3406 }
 0xbfc   :  { %909 = vrot.lane.b32.xlu0 %v3407_v61, %s3481_s26 }
 0xbfd   :  { %v3409_v63 = vpop.eup %3408 }
 0xbfe   :  { %v904_v1 = vadd.f32 1.0, %v3409_v63 }
 0xc00   :  { %v905_v2 = vmul.f32 0.5, %v904_v1 }
 0xc02   :  { %v907_v7 = vmul.f32 %v905_v2, %v3730_v19 }
 0xc6e   :  { %v910_v3 = vpop.permute.xlu0 %909 }
 0xc6f   :  { %v912_v6 = vmul.f32 %v910_v3, %v905_v2 }
 0xc71   :  { %914 = vrot.lane.b32.xlu1 %v912_v6, %s3482_s27 }
 0xce3   :  { %v915_v16 = vpop.permute.xlu1 %914 }
 0xce4   :  { %v3771_v9 = vadd.f32 %v915_v16, %v907_v7 }
 0xce6   :  { %3410 = vtanh.f32 %v3771_v9 }
 0xcf0   :  { %v3411_v17 = vpop.eup %3410 }
 0xcf1   :  { %920 = vrot.lane.b32.xlu0 %v3411_v17, %s3481_s26 }
 0xd63   :  { %v921_v20 = vpop.permute.xlu0 %920 }
 0xd64   :  { %v923_v22 = vmul.f32 %v921_v20, %v905_v2 }
 0xd66   :  { %925 = vrot.lane.b32.xlu1 %v923_v22, %s3482_s27 }
 0xdd8   :  { %v926_v23 = vpop.permute.xlu1 %925 }
 0xdd9   :  { %3007 = vmatmul.mubr.msk.f32.vlgmr.msra.gmra.mrb[4].mxu1 %vm217_vm2, %v926_v23 }
 0xdda   :  { %3272 = vmatpush3.bf16.msra.mxu1 %v3561_v5  ;;  %3050 = vmatprep.mubr.msk.f32.mxu1 %vm3479_vm0, %v3480_v4 }
 0xddb   :  { %3273 = vmatprep.subr.bf16.mxu1 %v3478_v0 }
 0xdde   :  { %3275 = vmatpush3.bf16.msra.mxu1 %v3576_v11 }
 0xddf   :  { %3276 = vmatprep.subr.bf16.mxu1 %v3478_v0 }
 0xeac   :  { %v995_v24 = vpop.f32.mrb[4].mxu1 }
 0xead   :  { %v3352_v25 = vadd.f32 %v3662_v46, %v995_v24  ;;  %v3008_v26 = vpop.f32.mrb[5].mxu1 }
 0xeae   :  { %v172_v26 = vadd.f32 %v3622_v21, %v3704_v12 }
 0xeaf   :  { %3412 = vtanh.f32 %v3352_v25  ;;  %v999_v28 = vmul.f32 0.5, %v3352_v25 }
 0xeb1   :  { %3414 = vtanh.f32 %v999_v28 }
 0xeb9   :  { %v3413_v27 = vpop.eup %3412 }
 0xeba   :  { %1006 = vrot.lane.b32.xlu0 %v3413_v27, %s3481_s26 }
 0xebb   :  { %v3415_v29 = vpop.eup %3414 }
 0xebc   :  { %v1001_v30 = vadd.f32 1.0, %v3415_v29 }
 0xebe   :  { %v1002_v31 = vmul.f32 0.5, %v1001_v30 }
 0xec0   :  { %v1004_v33 = vmul.f32 %v1002_v31, %v3746_v52 }
 0xf2c   :  { %v1007_v32 = vpop.permute.xlu0 %1006 }
 0xf2d   :  { %v1009_v19 = vmul.f32 %v1007_v32, %v1002_v31 }
 0xf2f   :  { %1011 = vrot.lane.b32.xlu1 %v1009_v19, %s3482_s27 }
 0xfa1   :  { %v1012_v34 = vpop.permute.xlu1 %1011 }
 0xfa2   :  { %v3787_v36 = vadd.f32 %v1012_v34, %v1004_v33 }
 0xfa4   :  { %3416 = vtanh.f32 %v3787_v36 }
 0xfae   :  { %v3417_v37 = vpop.eup %3416 }
 0xfaf   :  { %1017 = vrot.lane.b32.xlu0 %v3417_v37, %s3481_s26 }
0x1021   :  { %v1018_v35 = vpop.permute.xlu0 %1017 }
0x1022   :  { %v1020_v38 = vmul.f32 %v1018_v35, %v1002_v31 }
0x1024   :  { %1022 = vrot.lane.b32.xlu1 %v1020_v38, %s3482_s27 }
0x1096   :  { %v1023_v40 = vpop.permute.xlu1 %1022 }
0x1097   :  { %1026 = vst.msk [vmem:[#allocation3 + $0x10] sm:$0xff] %vm217_vm2, %v1023_v40  ;;  %3018 = vmatmul.mubr.msk.f32.vlgmr.msra.gmra.mrb[12].mxu0 %vm217_vm2, %v1023_v40 }
0x1098   :  { %3260 = vmatpush3.bf16.msra.mxu0 %v3591_v15  ;;  %3028 = vmatprep.mubr.msk.f32.mxu0 %vm3479_vm0, %v3480_v4 }
0x1099   :  { %3261 = vmatprep.subr.bf16.mxu0 %v3478_v0 }
0x109c   :  { %3263 = vmatpush3.bf16.msra.mxu0 %v3605_v18 }
0x109d   :  { %3264 = vmatprep.subr.bf16.mxu0 %v3478_v0 }
0x109f   :  { %3029 = vmatmul.mubr.msk.f32.vlgmr.msra.gmra.mrb[14].mxu0 %vm217_vm2, %v926_v23 }
0x10a0   :  { %3266 = vmatpush3.bf16.msra.mxu0 %v3639_v39  ;;  %3039 = vmatprep.mubr.msk.f32.mxu0 %vm3479_vm0, %v3480_v4 }
0x10a1   :  { %3267 = vmatprep.subr.bf16.mxu0 %v3478_v0 }
0x10a4   :  { %3269 = vmatpush3.bf16.msra.mxu0 %v3645_v41 }
0x10a5   :  { %3288 = vmatprep.subr.bf16.mxu0 %v3478_v0 }
0x1172   :  { %v1167_v43 = vpop.f32.mrb[14].mxu0 }
0x1173   :  { %v1171_v44 = vadd.f32 %v1167_v43, %v167_v42  ;;  %v3030_v45 = vpop.f32.mrb[15].mxu0 }
0x1175   :  { %3418 = vtanh.f32 %v1171_v44  ;;  %v1172_v48 = vmul.f32 0.5, %v1171_v44 }
0x1177   :  { %3420 = vtanh.f32 %v1172_v48 }
0x117f   :  { %v3419_v47 = vpop.eup %3418 }
0x1180   :  { %1179 = vrot.lane.b32.xlu0 %v3419_v47, %s3481_s26 }
0x1181   :  { %v3421_v49 = vpop.eup %3420 }
0x1182   :  { %v1174_v50 = vadd.f32 1.0, %v3421_v49 }
0x1184   :  { %v1175_v51 = vmul.f32 0.5, %v1174_v50 }
0x1186   :  { %v1177_v54 = vmul.f32 %v1175_v51, %v3771_v9 }
0x11f2   :  { %v1180_v52 = vpop.permute.xlu0 %1179 }
0x11f3   :  { %v1182_v53 = vmul.f32 %v1180_v52, %v1175_v51 }
0x11f5   :  { %1184 = vrot.lane.b32.xlu1 %v1182_v53, %s3482_s27 }
0x1267   :  { %v1185_v55 = vpop.permute.xlu1 %1184 }
0x1268   :  { %v3812_v8 = vadd.f32 %v1185_v55, %v1177_v54 }
0x126a   :  { %3422 = vtanh.f32 %v3812_v8 }
0x1274   :  { %v3423_v56 = vpop.eup %3422 }
0x1275   :  { %1190 = vrot.lane.b32.xlu0 %v3423_v56, %s3481_s26 }
0x12e7   :  { %v1191_v57 = vpop.permute.xlu0 %1190 }
0x12e8   :  { %v1193_v58 = vmul.f32 %v1191_v57, %v1175_v51 }
0x12ea   :  { %1195 = vrot.lane.b32.xlu1 %v1193_v58, %s3482_s27 }
0x135c   :  { %v1196_v59 = vpop.permute.xlu1 %1195 }
0x135d   :  { %3040 = vmatmul.mubr.msk.f32.vlgmr.msra.gmra.mrb[12].mxu0 %vm217_vm2, %v1196_v59 }
0x135e   :  { %3290 = vmatpush3.bf16.msra.mxu0 %v3561_v5  ;;  %3083 = vmatprep.mubr.msk.f32.mxu0 %vm3479_vm0, %v3480_v4 }
0x135f   :  { %3291 = vmatprep.subr.bf16.mxu0 %v3478_v0 }
0x1362   :  { %3293 = vmatpush3.bf16.msra.mxu0 %v3576_v11 }
0x1363   :  { %3294 = vmatprep.subr.bf16.mxu0 %v3478_v0 }
0x1430   :  { %v1265_v60 = vpop.f32.mrb[12].mxu0 }
0x1431   :  { %v3353_v61 = vadd.f32 %v3662_v46, %v1265_v60  ;;  %v3041_v62 = vpop.f32.mrb[13].mxu0 }
0x1433   :  { %3424 = vtanh.f32 %v3353_v61  ;;  %v1269_v1 = vmul.f32 0.5, %v3353_v61  ;;  %v177_v61 = vadd.f32 %v3702_v10, %v3622_v21 }
0x1435   :  { %3426 = vtanh.f32 %v1269_v1 }
0x143d   :  { %v3425_v63 = vpop.eup %3424 }
0x143e   :  { %1276 = vrot.lane.b32.xlu0 %v3425_v63, %s3481_s26 }
0x143f   :  { %v3427_v2 = vpop.eup %3426 }
0x1440   :  { %v1271_v3 = vadd.f32 1.0, %v3427_v2 }
0x1442   :  { %v1272_v6 = vmul.f32 0.5, %v1271_v3 }
0x1444   :  { %v1274_v9 = vmul.f32 %v1272_v6, %v3787_v36 }
0x14b0   :  { %v1277_v7 = vpop.permute.xlu0 %1276 }
0x14b1   :  { %v1279_v16 = vmul.f32 %v1277_v7, %v1272_v6 }
0x14b3   :  { %1281 = vrot.lane.b32.xlu1 %v1279_v16, %s3482_s27 }
0x1525   :  { %v1282_v17 = vpop.permute.xlu1 %1281 }
0x1526   :  { %v3828_v20 = vadd.f32 %v1282_v17, %v1274_v9 }
0x1528   :  { %3428 = vtanh.f32 %v3828_v20 }
0x1532   :  { %v3429_v22 = vpop.eup %3428 }
0x1533   :  { %1287 = vrot.lane.b32.xlu0 %v3429_v22, %s3481_s26 }
0x15a5   :  { %v1288_v23 = vpop.permute.xlu0 %1287 }
0x15a6   :  { %v1290_v24 = vmul.f32 %v1288_v23, %v1272_v6 }
0x15a8   :  { %1292 = vrot.lane.b32.xlu1 %v1290_v24, %s3482_s27 }
0x161a   :  { %v1293_v25 = vpop.permute.xlu1 %1292 }
0x161b   :  { %1296 = vst.msk [vmem:[#allocation3 + $0x18] sm:$0xff] %vm217_vm2, %v1293_v25  ;;  %3051 = vmatmul.mubr.msk.f32.vlgmr.msra.gmra.mrb[8].mxu1 %vm217_vm2, %v1293_v25 }
0x161c   :  { %3278 = vmatpush3.bf16.msra.mxu1 %v3591_v15  ;;  %3061 = vmatprep.mubr.msk.f32.mxu1 %vm3479_vm0, %v3480_v4 }
0x161d   :  { %3279 = vmatprep.subr.bf16.mxu1 %v3478_v0 }
0x1620   :  { %3281 = vmatpush3.bf16.msra.mxu1 %v3605_v18 }
0x1621   :  { %3282 = vmatprep.subr.bf16.mxu1 %v3478_v0 }
0x1623   :  { %3062 = vmatmul.mubr.msk.f32.vlgmr.msra.gmra.mrb[10].mxu1 %vm217_vm2, %v1196_v59 }
0x1624   :  { %3284 = vmatpush3.bf16.msra.mxu1 %v3639_v39  ;;  %3072 = vmatprep.mubr.msk.f32.mxu1 %vm3479_vm0, %v3480_v4 }
0x1625   :  { %3285 = vmatprep.subr.bf16.mxu1 %v3478_v0 }
0x1628   :  { %3287 = vmatpush3.bf16.msra.mxu1 %v3645_v41 }
0x1629   :  { %3306 = vmatprep.subr.bf16.mxu1 %v3478_v0 }
0x16f6   :  { %v1437_v27 = vpop.f32.mrb[10].mxu1 }
0x16f7   :  { %v1441_v28 = vadd.f32 %v1437_v27, %v172_v26  ;;  %v3063_v29 = vpop.f32.mrb[11].mxu1 }
0x16f9   :  { %3430 = vtanh.f32 %v1441_v28  ;;  %v1442_v31 = vmul.f32 0.5, %v1441_v28 }
0x16fb   :  { %3432 = vtanh.f32 %v1442_v31 }
0x1703   :  { %v3431_v30 = vpop.eup %3430 }
0x1704   :  { %1449 = vrot.lane.b32.xlu0 %v3431_v30, %s3481_s26 }
0x1705   :  { %v3433_v32 = vpop.eup %3432 }
0x1706   :  { %v1444_v19 = vadd.f32 1.0, %v3433_v32 }
0x1708   :  { %v1445_v33 = vmul.f32 0.5, %v1444_v19 }
0x170a   :  { %v1447_v37 = vmul.f32 %v1445_v33, %v3812_v8 }
0x1776   :  { %v1450_v34 = vpop.permute.xlu0 %1449 }
0x1777   :  { %v1452_v36 = vmul.f32 %v1450_v34, %v1445_v33 }
0x1779   :  { %1454 = vrot.lane.b32.xlu1 %v1452_v36, %s3482_s27 }
0x17eb   :  { %v1455_v35 = vpop.permute.xlu1 %1454 }
0x17ec   :  { %v3853_v12 = vadd.f32 %v1455_v35, %v1447_v37 }
0x17ee   :  { %3434 = vtanh.f32 %v3853_v12 }
0x17f8   :  { %v3435_v38 = vpop.eup %3434 }
0x17f9   :  { %1460 = vrot.lane.b32.xlu0 %v3435_v38, %s3481_s26 }
0x186b   :  { %v1461_v40 = vpop.permute.xlu0 %1460 }
0x186c   :  { %v1463_v42 = vmul.f32 %v1461_v40, %v1445_v33 }
0x186e   :  { %1465 = vrot.lane.b32.xlu1 %v1463_v42, %s3482_s27  ;;  %v182_v42 = vadd.f32 %v3622_v21, %v3708_v14 }
0x18e0   :  { %v1466_v43 = vpop.permute.xlu1 %1465 }
0x18e1   :  { %3073 = vmatmul.mubr.msk.f32.vlgmr.msra.gmra.mrb[8].mxu1 %vm217_vm2, %v1466_v43 }
0x18e2   :  { %3308 = vmatpush3.bf16.msra.mxu1 %v3561_v5  ;;  %3116 = vmatprep.mubr.msk.f32.mxu1 %vm3479_vm0, %v3480_v4 }
0x18e3   :  { %3309 = vmatprep.subr.bf16.mxu1 %v3478_v0 }
0x18e6   :  { %3311 = vmatpush3.bf16.msra.mxu1 %v3576_v11 }
0x18e7   :  { %3312 = vmatprep.subr.bf16.mxu1 %v3478_v0 }
0x19b4   :  { %v1535_v44 = vpop.f32.mrb[8].mxu1 }
0x19b5   :  { %v3354_v45 = vadd.f32 %v3662_v46, %v1535_v44  ;;  %v3074_v47 = vpop.f32.mrb[9].mxu1 }
0x19b7   :  { %3436 = vtanh.f32 %v3354_v45  ;;  %v1539_v49 = vmul.f32 0.5, %v3354_v45 }
0x19b9   :  { %3438 = vtanh.f32 %v1539_v49 }
0x19c1   :  { %v3437_v48 = vpop.eup %3436 }
0x19c2   :  { %1546 = vrot.lane.b32.xlu0 %v3437_v48, %s3481_s26 }
0x19c3   :  { %v3439_v50 = vpop.eup %3438 }
0x19c4   :  { %v1541_v51 = vadd.f32 1.0, %v3439_v50 }
0x19c6   :  { %v1542_v52 = vmul.f32 0.5, %v1541_v51 }
0x19c8   :  { %v1544_v55 = vmul.f32 %v1542_v52, %v3828_v20 }
0x1a34   :  { %v1547_v53 = vpop.permute.xlu0 %1546 }
0x1a35   :  { %v1549_v54 = vmul.f32 %v1547_v53, %v1542_v52 }
0x1a37   :  { %1551 = vrot.lane.b32.xlu1 %v1549_v54, %s3482_s27 }
0x1aa9   :  { %v1552_v8 = vpop.permute.xlu1 %1551 }
0x1aaa   :  { %v3869_v56 = vadd.f32 %v1552_v8, %v1544_v55 }
0x1aac   :  { %3440 = vtanh.f32 %v3869_v56 }
0x1ab6   :  { %v3441_v57 = vpop.eup %3440 }
0x1ab7   :  { %1557 = vrot.lane.b32.xlu0 %v3441_v57, %s3481_s26 }
0x1b29   :  { %v1558_v58 = vpop.permute.xlu0 %1557 }
0x1b2a   :  { %v1560_v59 = vmul.f32 %v1558_v58, %v1542_v52 }
0x1b2c   :  { %1562 = vrot.lane.b32.xlu1 %v1560_v59, %s3482_s27 }
0x1b9e   :  { %v1563_v60 = vpop.permute.xlu1 %1562 }
0x1b9f   :  { %1566 = vst.msk [vmem:[#allocation3 + $0x20] sm:$0xff] %vm217_vm2, %v1563_v60  ;;  %3084 = vmatmul.mubr.msk.f32.vlgmr.msra.gmra.mrb[16].mxu0 %vm217_vm2, %v1563_v60 }
0x1ba0   :  { %3296 = vmatpush3.bf16.msra.mxu0 %v3591_v15  ;;  %3094 = vmatprep.mubr.msk.f32.mxu0 %vm3479_vm0, %v3480_v4 }
0x1ba1   :  { %3297 = vmatprep.subr.bf16.mxu0 %v3478_v0 }
0x1ba4   :  { %3299 = vmatpush3.bf16.msra.mxu0 %v3605_v18 }
0x1ba5   :  { %3300 = vmatprep.subr.bf16.mxu0 %v3478_v0 }
0x1ba7   :  { %3095 = vmatmul.mubr.msk.f32.vlgmr.msra.gmra.mrb[18].mxu0 %vm217_vm2, %v1466_v43 }
0x1ba8   :  { %3302 = vmatpush3.bf16.msra.mxu0 %v3639_v39  ;;  %3105 = vmatprep.mubr.msk.f32.mxu0 %vm3479_vm0, %v3480_v4 }
0x1ba9   :  { %3303 = vmatprep.subr.bf16.mxu0 %v3478_v0 }
0x1bac   :  { %3305 = vmatpush3.bf16.msra.mxu0 %v3645_v41 }
0x1bad   :  { %3324 = vmatprep.subr.bf16.mxu0 %v3478_v0 }
0x1c7a   :  { %v1707_v62 = vpop.f32.mrb[18].mxu0 }
0x1c7b   :  { %v1711_v63 = vadd.f32 %v1707_v62, %v177_v61  ;;  %v3096_v1 = vpop.f32.mrb[19].mxu0 }
0x1c7d   :  { %3442 = vtanh.f32 %v1711_v63  ;;  %v1712_v3 = vmul.f32 0.5, %v1711_v63 }
0x1c7f   :  { %3444 = vtanh.f32 %v1712_v3 }
0x1c87   :  { %v3443_v2 = vpop.eup %3442 }
0x1c88   :  { %1719 = vrot.lane.b32.xlu0 %v3443_v2, %s3481_s26 }
0x1c89   :  { %v3445_v6 = vpop.eup %3444 }
0x1c8a   :  { %v1714_v7 = vadd.f32 1.0, %v3445_v6 }
0x1c8c   :  { %v1715_v16 = vmul.f32 0.5, %v1714_v7 }
0x1c8e   :  { %v1717_v20 = vmul.f32 %v1715_v16, %v3853_v12 }
0x1cfa   :  { %v1720_v9 = vpop.permute.xlu0 %1719 }
0x1cfb   :  { %v1722_v17 = vmul.f32 %v1720_v9, %v1715_v16 }
0x1cfd   :  { %1724 = vrot.lane.b32.xlu1 %v1722_v17, %s3482_s27 }
0x1d6f   :  { %v1725_v22 = vpop.permute.xlu1 %1724 }
0x1d70   :  { %v3894_v10 = vadd.f32 %v1725_v22, %v1717_v20 }
0x1d72   :  { %3446 = vtanh.f32 %v3894_v10 }
0x1d7c   :  { %v3447_v23 = vpop.eup %3446 }
0x1d7d   :  { %1730 = vrot.lane.b32.xlu0 %v3447_v23, %s3481_s26 }
0x1def   :  { %v1731_v24 = vpop.permute.xlu0 %1730 }
0x1df0   :  { %v1733_v25 = vmul.f32 %v1731_v24, %v1715_v16 }
0x1df2   :  { %1735 = vrot.lane.b32.xlu1 %v1733_v25, %s3482_s27 }
0x1e64   :  { %v1736_v26 = vpop.permute.xlu1 %1735 }
0x1e65   :  { %3106 = vmatmul.mubr.msk.f32.vlgmr.msra.gmra.mrb[16].mxu0 %vm217_vm2, %v1736_v26 }
0x1e66   :  { %3326 = vmatpush3.bf16.msra.mxu0 %v3561_v5  ;;  %3149 = vmatprep.mubr.msk.f32.mxu0 %vm3479_vm0, %v3480_v4 }
0x1e67   :  { %3327 = vmatprep.subr.bf16.mxu0 %v3478_v0 }
0x1e6a   :  { %3329 = vmatpush3.bf16.msra.mxu0 %v3576_v11 }
0x1e6b   :  { %3330 = vmatprep.subr.bf16.mxu0 %v3478_v0 }
0x1f38   :  { %v1805_v27 = vpop.f32.mrb[16].mxu0 }
0x1f39   :  { %v3355_v28 = vadd.f32 %v3662_v46, %v1805_v27  ;;  %v3107_v29 = vpop.f32.mrb[17].mxu0 }
0x1f3b   :  { %3448 = vtanh.f32 %v3355_v28  ;;  %v1809_v31 = vmul.f32 0.5, %v3355_v28 }
0x1f3d   :  { %3450 = vtanh.f32 %v1809_v31 }
0x1f45   :  { %v3449_v30 = vpop.eup %3448 }
0x1f46   :  { %1816 = vrot.lane.b32.xlu0 %v3449_v30, %s3481_s26 }
0x1f47   :  { %v3451_v5 = vpop.eup %3450 }
0x1f48   :  { %v1811_v32 = vadd.f32 1.0, %v3451_v5 }
0x1f4a   :  { %v1812_v19 = vmul.f32 0.5, %v1811_v32 }
0x1f4c   :  { %v1814_v11 = vmul.f32 %v1812_v19, %v3869_v56 }
0x1fb8   :  { %v1817_v33 = vpop.permute.xlu0 %1816 }
0x1fb9   :  { %v1819_v34 = vmul.f32 %v1817_v33, %v1812_v19 }
0x1fbb   :  { %1821 = vrot.lane.b32.xlu1 %v1819_v34, %s3482_s27 }
0x202d   :  { %v1822_v36 = vpop.permute.xlu1 %1821 }
0x202e   :  { %v1824_v37 = vadd.f32 %v1822_v36, %v1814_v11  ;;  %v3483_v11 = vmov 0  }
0x202f   :  { %3380 = vset.pattern.permute.xlu1 %v3483_v11  ;;  %3381 = vset.pattern.permute.xlu0 %v3483_v11 }
0x2030   :  { %3452 = vtanh.f32 %v1824_v37 }
0x203a   :  { %v3453_v35 = vpop.eup %3452 }
0x203b   :  { %1827 = vrot.lane.b32.xlu0 %v3453_v35, %s3481_s26 }
0x20ad   :  { %v1828_v12 = vpop.permute.xlu0 %1827 }
0x20ae   :  { %v1830_v38 = vmul.f32 %v1828_v12, %v1812_v19 }
0x20b0   :  { %1832 = vrot.lane.b32.xlu1 %v1830_v38, %s3482_s27 }
0x2122   :  { %v1833_v40 = vpop.permute.xlu1 %1832 }
0x2123   :  { %1836 = vst.msk [vmem:[#allocation3 + $0x28] sm:$0xff] %vm217_vm2, %v1833_v40  ;;  %3117 = vmatmul.mubr.msk.f32.vlgmr.msra.gmra.mrb[12].mxu1 %vm217_vm2, %v1833_v40 }
0x2124   :  { %3314 = vmatpush3.bf16.msra.mxu1 %v3591_v15  ;;  %3127 = vmatprep.mubr.msk.f32.mxu1 %vm3479_vm0, %v3480_v4 }
0x2125   :  { %3315 = vmatprep.subr.bf16.mxu1 %v3478_v0 }
0x2128   :  { %3317 = vmatpush3.bf16.msra.mxu1 %v3605_v18 }
0x2129   :  { %3318 = vmatprep.subr.bf16.mxu1 %v3478_v0 }
0x212b   :  { %3128 = vmatmul.mubr.msk.f32.vlgmr.msra.gmra.mrb[14].mxu1 %vm217_vm2, %v1736_v26 }
0x212c   :  { %3320 = vmatpush3.bf16.msra.mxu1 %v3639_v39  ;;  %3138 = vmatprep.mubr.msk.f32.mxu1 %vm3479_vm0, %v3480_v4 }
0x212d   :  { %3321 = vmatprep.subr.bf16.mxu1 %v3478_v0 }
0x2130   :  { %3323 = vmatpush3.bf16.msra.mxu1 %v3645_v41 }
0x21fe   :  { %v1977_v43 = vpop.f32.mrb[14].mxu1 }
0x21ff   :  { %v1981_v44 = vadd.f32 %v1977_v43, %v182_v42  ;;  %v3129_v45 = vpop.f32.mrb[15].mxu1  ;;  %v2387_v43 = vld [vmem:[%s4041_s1 + $0x10] sm:$0xff] }
0x2200   :  { %v2390_v45 = vld [vmem:[%s4041_s1 + $0x28] sm:$0xff] }
0x2201   :  { %3454 = vtanh.f32 %v1981_v44  ;;  %v1982_v48 = vmul.f32 0.5, %v1981_v44  ;;  %v2388_v44 = vld [vmem:[%s4041_s1 + $0x18] sm:$0xff] }
0x2203   :  { %3456 = vtanh.f32 %v1982_v48 }
0x220b   :  { %v3455_v47 = vpop.eup %3454 }
0x220c   :  { %1989 = vrot.lane.b32.xlu0 %v3455_v47, %s3481_s26  ;;  %v2391_v47 = vld [vmem:[%s4041_s1 + $0x30] sm:$0xff] }
0x220d   :  { %v3457_v49 = vpop.eup %3456 }
0x220e   :  { %v1984_v50 = vadd.f32 1.0, %v3457_v49 }
0x2210   :  { %v1985_v51 = vmul.f32 0.5, %v1984_v50 }
0x2212   :  { %v1987_v54 = vmul.f32 %v1985_v51, %v3894_v10 }
0x227e   :  { %v1990_v52 = vpop.permute.xlu0 %1989 }
0x227f   :  { %v1992_v53 = vmul.f32 %v1990_v52, %v1985_v51  ;;  %v2442_v52 = vld [vmem:[%s4042_s8 + $0x8] sm:$0xff] }
0x2281   :  { %1994 = vrot.lane.b32.xlu1 %v1992_v53, %s3482_s27  ;;  %v2443_v53 = vld [vmem:[%s4042_s8 + $0x10] sm:$0xff] }
0x22f3   :  { %v1995_v55 = vpop.permute.xlu1 %1994 }
0x22f4   :  { %v1997_v14 = vadd.f32 %v1995_v55, %v1987_v54  ;;  %v2444_v55 = vld [vmem:[%s4042_s8 + $0x18] sm:$0xff] }
0x22f6   :  { %3458 = vtanh.f32 %v1997_v14 }
0x2300   :  { %v3459_v8 = vpop.eup %3458 }
0x2301   :  { %2000 = vrot.lane.b32.xlu0 %v3459_v8, %s3481_s26 }
0x2373   :  { %v2001_v56 = vpop.permute.xlu0 %2000 }
0x2374   :  { %v2003_v57 = vmul.f32 %v2001_v56, %v1985_v51  ;;  %v2441_v51 = vld [vmem:[%s4042_s8] sm:$0xff]  ;;  %v2386_v56 = vld [vmem:[%s4041_s1 + $0x8] sm:$0xff] }
0x2375   :  { %v3342_v54 = vpack.c.bf16 %v2442_v52, %v2441_v51 }
0x2376   :  { %2005 = vrot.lane.b32.xlu1 %v2003_v57, %s3482_s27  ;;  %v2377_v57 = vld [vmem:[#allocation3] sm:$0xff] }
0x2377   :  { %3343 = vmatprep.subr.bf16.mxu1 %v3342_v54 }
0x23e8   :  { %v2006_v58 = vpop.permute.xlu1 %2005 }
0x23e9   :  { %3139 = vmatmul.mubr.msk.f32.vlgmr.msra.gmra.mrb[12].mxu1 %vm217_vm2, %v2006_v58 }
0x23ea   :  { %3345 = vmatpush3.bf16.msra.mxu1 %v3342_v54 }
0x24bc   :  { %v2075_v59 = vpop.f32.mrb[12].mxu1 }
0x24bd   :  { %v3356_v60 = vadd.f32 %v3662_v46, %v2075_v59  ;;  %v3140_v61 = vpop.f32.mrb[13].mxu1 }
0x24bf   :  { %3460 = vtanh.f32 %v3356_v60  ;;  %v2079_v63 = vmul.f32 0.5, %v3356_v60  ;;  %v2389_v60 = vld [vmem:[%s4041_s1 + $0x20] sm:$0xff] }
0x24c1   :  { %3462 = vtanh.f32 %v2079_v63  ;;  %v2392_v63 = vld [vmem:[%s4041_s1 + $0x38] sm:$0xff] }
0x24c9   :  { %v3461_v62 = vpop.eup %3460 }
0x24ca   :  { %2086 = vrot.lane.b32.xlu0 %v3461_v62, %s3481_s26 }
0x24cb   :  { %v3463_v1 = vpop.eup %3462 }
0x24cc   :  { %v2081_v2 = vadd.f32 1.0, %v3463_v1 }
0x24ce   :  { %v2082_v3 = vmul.f32 0.5, %v2081_v2 }
0x24d0   :  { %v2084_v16 = vmul.f32 %v2082_v3, %v1824_v37 }
0x253c   :  { %v2087_v6 = vpop.permute.xlu0 %2086 }
0x253d   :  { %v2089_v7 = vmul.f32 %v2087_v6, %v2082_v3 }
0x253f   :  { %2091 = vrot.lane.b32.xlu1 %v2089_v7, %s3482_s27  ;;  %v2379_v7 = vld [vmem:[#allocation3 + $0x10] sm:$0xff] }
0x25b1   :  { %v2092_v9 = vpop.permute.xlu1 %2091 }
0x25b2   :  { %v3937_v17 = vadd.f32 %v2092_v9, %v2084_v16 }
0x25b4   :  { %3464 = vtanh.f32 %v3937_v17 }
0x25be   :  { %v3465_v20 = vpop.eup %3464 }
0x25bf   :  { %2097 = vrot.lane.b32.xlu0 %v3465_v20, %s3481_s26  ;;  %v2380_v20 = vld [vmem:[#allocation3 + $0x18] sm:$0xff] }
0x2631   :  { %v2098_v22 = vpop.permute.xlu0 %2097 }
0x2632   :  { %v2100_v10 = vmul.f32 %v2098_v22, %v2082_v3  ;;  %v2378_v3 = vld [vmem:[#allocation3 + $0x8] sm:$0xff]  ;;  %v2381_v22 = vld [vmem:[#allocation3 + $0x20] sm:$0xff] }
0x2634   :  { %2102 = vrot.lane.b32.xlu1 %v2100_v10, %s3482_s27 }
0x26a6   :  { %v2103_v23 = vpop.permute.xlu1 %2102 }
0x26a7   :  { %2106 = vst.msk [vmem:[#allocation3 + $0x30] sm:$0xff] %vm217_vm2, %v2103_v23  ;;  %3150 = vmatmul.mubr.msk.f32.vlgmr.msra.gmra.mrb[20].mxu0 %vm217_vm2, %v2103_v23 }
0x26a8   :  { %3332 = vmatpush3.bf16.msra.mxu0 %v3591_v15  ;;  %3160 = vmatprep.mubr.msk.f32.mxu0 %vm3479_vm0, %v3480_v4  ;;  %v187_v15 = vadd.f32 %v3706_v13, %v3622_v21 }
0x26a9   :  { %3333 = vmatprep.subr.bf16.mxu0 %v3478_v0 }
0x26ac   :  { %3335 = vmatpush3.bf16.msra.mxu0 %v3605_v18 }
0x26ad   :  { %3336 = vmatprep.subr.bf16.mxu0 %v3478_v0 }
0x26af   :  { %3161 = vmatmul.mubr.msk.f32.vlgmr.msra.gmra.mrb[22].mxu0 %vm217_vm2, %v2006_v58 }
0x26b0   :  { %3338 = vmatpush3.bf16.msra.mxu0 %v3639_v39  ;;  %3171 = vmatprep.mubr.msk.f32.mxu0 %vm3479_vm0, %v3480_v4 }
0x26b1   :  { %3339 = vmatprep.subr.bf16.mxu0 %v3478_v0 }
0x26b4   :  { %3341 = vmatpush3.bf16.msra.mxu0 %v3645_v41 }
0x2782   :  { %v2247_v24 = vpop.f32.mrb[22].mxu0 }
0x2783   :  { %v2251_v25 = vadd.f32 %v2247_v24, %v187_v15  ;;  %v3162_v26 = vpop.f32.mrb[23].mxu0 }
0x2785   :  { %3466 = vtanh.f32 %v2251_v25  ;;  %v2252_v27 = vmul.f32 0.5, %v2251_v25  ;;  %v2382_v25 = vld [vmem:[#allocation3 + $0x28] sm:$0xff] }
0x2787   :  { %3468 = vtanh.f32 %v2252_v27 }
0x278f   :  { %v3467_v18 = vpop.eup %3466 }
0x2790   :  { %2259 = vrot.lane.b32.xlu0 %v3467_v18, %s3481_s26  ;;  %v2383_v18 = vld [vmem:[#allocation3 + $0x30] sm:$0xff] }
0x2791   :  { %v3469_v39 = vpop.eup %3468 }
0x2792   :  { %v2254_v28 = vadd.f32 1.0, %v3469_v39 }
0x2794   :  { %v2255_v29 = vmul.f32 0.5, %v2254_v28 }
0x2796   :  { %v2257_v0 = vmul.f32 %v2255_v29, %v1997_v14  ;;  %v3346_v14 = vpack.c.bf16 %v2444_v55, %v2443_v53 }
0x2798   :  { %3347 = vmatprep.subr.bf16.mxu1 %v3346_v14 }
0x2799   :  { %3349 = vmatpush3.bf16.msra.mxu1 %v3346_v14 }
0x2802   :  { %v2260_v4 = vpop.permute.xlu0 %2259 }
0x2803   :  { %v2262_v30 = vmul.f32 %v2260_v4, %v2255_v29 }
0x2805   :  { %2264 = vrot.lane.b32.xlu1 %v2262_v30, %s3482_s27  ;;  %v2741_v30 = vld [vmem:[%s4043_s9] ss:$0 sm:$0xff] }
0x2877   :  { %v2265_v41 = vpop.permute.xlu1 %2264 }
0x2878   :  { %v2267_v31 = vadd.f32 %v2265_v41, %v2257_v0  ;;  %v17_v0 = vstv %s4044_s11 }
0x2879   :  { %18 = vst [vmem:[#allocation4] sm:$0x1] %v17_v0 }
0x287a   :  { %3470 = vtanh.f32 %v2267_v31 }
0x2884   :  { %v3471_v21 = vpop.eup %3470 }
0x2885   :  { %2270 = vrot.lane.b32.xlu0 %v3471_v21, %s3481_s26 }
0x28f7   :  { %v2271_v13 = vpop.permute.xlu0 %2270 }
0x28f8   :  { %v2273_v5 = vmul.f32 %v2271_v13, %v2255_v29 }
0x28fa   :  { %2275 = vrot.lane.b32.xlu1 %v2273_v5, %s3482_s27  ;;  %v2750_v5 = vld [vmem:[%s4045_s10] ss:$0 sm:$0xff] }
0x296c   :  { %v2276_v32 = vpop.permute.xlu1 %2275 }
0x296d   :  { %3172 = vmatmul.mubr.msk.f32.vlgmr.msra.gmra.mrb[20].mxu0 %vm217_vm2, %v2276_v32 }
0x2a40   :  { %v2345_v19 = vpop.f32.mrb[20].mxu0 }
0x2a41   :  { %v3357_v33 = vadd.f32 %v3662_v46, %v2345_v19  ;;  %v3173_v34 = vpop.f32.mrb[21].mxu0  ;;  %v2385_v46 = vld [vmem:[%s4041_s1] sm:$0xff] }
0x2a43   :  { %3472 = vtanh.f32 %v3357_v33  ;;  %v2349_v37 = vmul.f32 0.5, %v3357_v33 }
0x2a45   :  { %3474 = vtanh.f32 %v2349_v37 }
0x2a4d   :  { %v3473_v36 = vpop.eup %3472 }
0x2a4e   :  { %2356 = vrot.lane.b32.xlu0 %v3473_v36, %s3481_s26 }
0x2a4f   :  { %v3475_v35 = vpop.eup %3474 }
0x2a50   :  { %v2351_v12 = vadd.f32 1.0, %v3475_v35 }
0x2a52   :  { %v2352_v38 = vmul.f32 0.5, %v2351_v12 }
0x2a54   :  { %v2354_v48 = vmul.f32 %v2352_v38, %v3937_v17 }
0x2ac0   :  { %v2357_v40 = vpop.permute.xlu0 %2356 }
0x2ac1   :  { %v2359_v42 = vmul.f32 %v2357_v40, %v2352_v38 }
0x2ac3   :  { %2361 = vrot.lane.b32.xlu1 %v2359_v42, %s3482_s27 }
0x2ac7   :  { %2395 = vperm.xlu1 %3380, %v2385_v46  }
0x2acb   :  { %2405 = vperm.xlu1 %3380, %v2387_v43  }
0x2acf   :  { %2410 = vperm.xlu1 %3380, %v2388_v44  }
0x2ad3   :  { %2420 = vperm.xlu1 %3380, %v2390_v45  }
0x2ad7   :  { %2425 = vperm.xlu1 %3380, %v2391_v47  }
0x2b35   :  { %v2362_v49 = vpop.permute.xlu1 %2361 }
0x2b36   :  { %v2364_v50 = vadd.f32 %v2362_v49, %v2354_v48 }
0x2b38   :  { %3476 = vtanh.f32 %v2364_v50 }
0x2b42   :  { %v3477_v8 = vpop.eup %3476 }
0x2b43   :  { %2367 = vrot.lane.b32.xlu0 %v3477_v8, %s3481_s26 }
0x2b46   :  { %v2396_v58 = vpop.permute.xlu1 %2395 }
0x2b47   :  { %v2433_v59 = vmul.f32 %v2396_v58, %v2377_v57  ;;  %2400 = vperm.xlu0 %3381, %v2386_v56  }
0x2b49   :  { %3182 = vmatprep.mubr.msk.f32.mxu1 %vm217_vm2, %v2433_v59 }
0x2b4a   :  { %v2406_v1 = vpop.permute.xlu1 %2405 }
0x2b4b   :  { %2415 = vperm.xlu0 %3381, %v2389_v60   ;;  %v2435_v17 = vmul.f32 %v2406_v1, %v2379_v7 }
0x2b4e   :  { %v2411_v2 = vpop.permute.xlu1 %2410 }
0x2b4f   :  { %v2436_v23 = vmul.f32 %v2411_v2, %v2380_v20  ;;  %v2751_v2 = vld [vmem:[#allocation4] ss:$0 sm:$0xff] }
0x2b52   :  { %v2421_v16 = vpop.permute.xlu1 %2420 }
0x2b53   :  { %v2438_v26 = vmul.f32 %v2421_v16, %v2382_v25  ;;  %v2654_v16 = vlaneseq }
0x2b55   :  { %v2655_v20 = vand.u32 127, %v2654_v16 }
0x2b56   :  { %v2426_v24 = vpop.permute.xlu1 %2425 }
0x2b57   :  { %v2439_v27 = vmul.f32 %v2426_v24, %v2383_v18 }
0x2bb5   :  { %v2368_v61 = vpop.permute.xlu0 %2367 }
0x2bb6   :  { %v2370_v62 = vmul.f32 %v2368_v61, %v2352_v38 }
0x2bb8   :  { %2372 = vrot.lane.b32.xlu0 %v2370_v62, %s3482_s27 }
0x2bbc   :  { %2430 = vperm.xlu0 %3381, %v2392_v63  }
0x2bc6   :  { %v2401_v6 = vpop.permute.xlu0 %2400 }
0x2bc7   :  { %v2434_v9 = vmul.f32 %v2401_v6, %v2378_v3 }
0x2bc9   :  { %3183 = vmatmul.mubr.msk.f32.vlgmr.msra.gmra.mrb[16].mxu1 %vm217_vm2, %v2434_v9 }
0x2bca   :  { %3185 = vmatprep.mubr.msk.f32.mxu1 %vm217_vm2, %v2435_v17  ;;  %v2416_v10 = vpop.permute.xlu0 %2415 }
0x2bcb   :  { %v2437_v15 = vmul.f32 %v2416_v10, %v2381_v22  ;;  %v2657_v22 = vshrl.u32 %v2654_v16, 7 }
0x2bcd   :  { %3186 = vmatmul.mubr.msk.f32.gmra.mrb[18].mxu1 %vm217_vm2, %v2436_v23  ;;  %v2658_v23 = vsub.s32 %v2655_v20, %v2657_v22 }
0x2bce   :  { %3188 = vmatprep.mubr.msk.f32.mxu1 %vm217_vm2, %v2437_v15 }
0x2bd1   :  { %3189 = vmatmul.mubr.msk.f32.gmra.mrb[20].mxu1 %vm217_vm2, %v2438_v26 }
0x2bd2   :  { %3191 = vmatprep.mubr.msk.f32.mxu1 %vm217_vm2, %v2439_v27 }
0x2c2a   :  { %v2373_v39 = vpop.permute.xlu0 %2372 }
0x2c2b   :  { %2376 = vst.msk [vmem:[#allocation3 + $0x38] sm:$0xff] %vm217_vm2, %v2373_v39 }
0x2c32   :  { %v2384_v28 = vld [vmem:[#allocation3 + $0x38] sm:$0xff] }
0x2c3b   :  { %v2431_v29 = vpop.permute.xlu0 %2430 }
0x2c3c   :  { %v2440_v4 = vmul.f32 %v2431_v29, %v2384_v28 }
0x2c3e   :  { %3192 = vmatmul.mubr.msk.f32.gmra.mrb[22].mxu1 %vm217_vm2, %v2440_v4 }
0x2c9c   :  { %v3184_v41 = vpop.f32.mrb[16].mxu1 }
0x2c9d   :  { %v2548_v31 = vadd.f32 %v3184_v41, %v2741_v30  ;;  %v2542_v21 = vpop.f32.mrb[17].mxu1 }
0x2c9e   :  { %v2543_v13 = vadd.f32 %v2741_v30, %v2542_v21 }
0x2c9f   :  { %v2582_v32 = vmax.f32 %v2548_v31, 0.0 }
0x2ca0   :  { %v2581_v19 = vmax.f32 %v2543_v13, 0.0  ;;  %v3187_v33 = vpop.f32.mrb[18].mxu1 }
0x2ca1   :  { %v2558_v34 = vadd.f32 %v3187_v33, %v2741_v30  ;;  %v2552_v11 = vpop.f32.mrb[19].mxu1  ;;  %v2597_v36 = vmul.f32 %v2750_v5, %v2582_v32 }
0x2ca2   :  { %v2553_v37 = vadd.f32 %v2741_v30, %v2552_v11  ;;  %v2596_v35 = vmul.f32 %v2750_v5, %v2581_v19 }
0x2ca3   :  { %v2584_v12 = vmax.f32 %v2558_v34, 0.0  ;;  %v2607_v38 = vsel %vm60_vm1, %v2597_v36, 0.0 }
0x2ca4   :  { %v2583_v40 = vmax.f32 %v2553_v37, 0.0  ;;  %2608 = vadd.xlane.f32.xlu0 %v2607_v38  ;;  %v3190_v42 = vpop.f32.mrb[20].mxu1  ;;  %v2604_v46 = vsel %vm60_vm1, %v2596_v35, 0.0 }
0x2ca5   :  { %v2568_v43 = vadd.f32 %v3190_v42, %v2741_v30  ;;  %v2562_v44 = vpop.f32.mrb[21].mxu1  ;;  %2605 = vadd.xlane.f32.xlu1 %v2604_v46  ;;  %v2599_v45 = vmul.f32 %v2750_v5, %v2584_v12 }
0x2ca6   :  { %v2563_v47 = vadd.f32 %v2741_v30, %v2562_v44  ;;  %v2598_v48 = vmul.f32 %v2750_v5, %v2583_v40 }
0x2ca7   :  { %v2586_v49 = vmax.f32 %v2568_v43, 0.0  ;;  %v2613_v50 = vsel %vm60_vm1, %v2599_v45, 0.0 }
0x2ca8   :  { %v2585_v51 = vmax.f32 %v2563_v47, 0.0  ;;  %v2610_v52 = vsel %vm60_vm1, %v2598_v48, 0.0 }
0x2ca9   :  { %2611 = vadd.xlane.f32.xlu0 %v2610_v52  ;;  %2614 = vadd.xlane.f32.xlu1 %v2613_v50  ;;  %v2601_v53 = vmul.f32 %v2750_v5, %v2586_v49 }
0x2caa   :  { %v2600_v54 = vmul.f32 %v2750_v5, %v2585_v51 }
0x2cab   :  { %v2619_v55 = vsel %vm60_vm1, %v2601_v53, 0.0 }
0x2cac   :  { %v2616_v14 = vsel %vm60_vm1, %v2600_v54, 0.0 }
0x2cad   :  { %2617 = vadd.xlane.f32.xlu0 %v2616_v14  ;;  %2620 = vadd.xlane.f32.xlu1 %v2619_v55 }
0x2d11   :  { %v3193_v8 = vpop.f32.mrb[22].mxu1 }
0x2d12   :  { %v2578_v56 = vadd.f32 %v3193_v8, %v2741_v30  ;;  %v2572_v57 = vpop.f32.mrb[23].mxu1 }
0x2d13   :  { %v2573_v58 = vadd.f32 %v2741_v30, %v2572_v57 }
0x2d14   :  { %v2588_v59 = vmax.f32 %v2578_v56, 0.0 }
0x2d15   :  { %v2587_v60 = vmax.f32 %v2573_v58, 0.0 }
0x2d16   :  { %v2603_v61 = vmul.f32 %v2750_v5, %v2588_v59 }
0x2d17   :  { %v2602_v62 = vmul.f32 %v2750_v5, %v2587_v60 }
0x2d18   :  { %v2625_v63 = vsel %vm60_vm1, %v2603_v61, 0.0 }
0x2d19   :  { %2626 = vadd.xlane.f32.xlu1 %v2625_v63  ;;  %v2622_v1 = vsel %vm60_vm1, %v2602_v62, 0.0 }
0x2d1a   :  { %2623 = vadd.xlane.f32.xlu0 %v2622_v1 }
0x2d30   :  { %2635 = vperm.xlu0 %3381, %v2751_v2  }
0x2d31   :  { %v2609_v3 = vpop.xlane.xlu0 %2608 }
0x2d32   :  { %v2606_v7 = vpop.xlane.xlu1 %2605 }
0x2d36   :  { %v2612_v6 = vpop.xlane.xlu0 %2611  ;;  %v2615_v17 = vpop.xlane.xlu1 %2614 }
0x2d3a   :  { %v2618_v9 = vpop.xlane.xlu0 %2617  ;;  %v2621_v15 = vpop.xlane.xlu1 %2620 }
0x2da6   :  { %v2627_v0 = vpop.xlane.xlu1 %2626 }
0x2da7   :  { %v2624_v10 = vpop.xlane.xlu0 %2623 }
0x2daf   :  { %v2636_v24 = vpop.permute.xlu0 %2635 }
0x2db0   :  { %v2638_v25 = vadd.f32 %v2636_v24, %v2606_v7  ;;  %v2639_v26 = vadd.f32 %v2636_v24, %v2609_v3  ;;  %v2640_v18 = vadd.f32 %v2636_v24, %v2612_v6  ;;  %v2641_v27 = vadd.f32 %v2636_v24, %v2615_v17 }
0x2db1   :  { %v2642_v39 = vadd.f32 %v2636_v24, %v2618_v9  ;;  %v2643_v28 = vadd.f32 %v2636_v24, %v2621_v15  ;;  %v2644_v41 = vadd.f32 %v2636_v24, %v2624_v10  ;;  %v2645_v31 = vadd.f32 %v2636_v24, %v2627_v0 }
0x2db2   :  { %v2659_v29 = vrot.slane %v2638_v25, %v2658_v23  ;;  %v2663_v4 = vrot.slane %v2639_v26, %v2658_v23  ;;  %v2667_v30 = vrot.slane %v2640_v18, %v2658_v23  ;;  %v2671_v21 = vrot.slane %v2641_v27, %v2658_v23 }
0x2db3   :  { %v2675_v5 = vrot.slane %v2642_v39, %v2658_v23  ;;  %v2679_v19 = vrot.slane %v2643_v28, %v2658_v23  ;;  %v2683_v34 = vrot.slane %v2644_v41, %v2658_v23  ;;  %v2687_v36 = vrot.slane %v2645_v31, %v2658_v23 }
0x2db4   :  { %v2689_v13 = vsel %vm2688_vm3, %v2663_v4, %v2659_v29 }
0x2db5   :  { %v2691_v32 = vsel %vm2690_vm4, %v2667_v30, %v2689_v13 }
0x2db6   :  { %v2693_v33 = vsel %vm2692_vm5, %v2671_v21, %v2691_v32 }
0x2db7   :  { %v2695_v11 = vsel %vm2694_vm6, %v2675_v5, %v2693_v33 }
0x2db8   :  { %v2697_v37 = vsel %vm2696_vm7, %v2679_v19, %v2695_v11 }
0x2db9   :  { %v2699_v35 = vsel %vm2698_vm8, %v2683_v34, %v2697_v37 }
0x2dba   :  { %v2701_v12 = vsel %vm2700_vm9, %v2687_v36, %v2699_v35 }
0x2dbb   :  { %2704 = vst.msk [vmem:[%s4046_s12] sm:$0xff] %vm2703_vm10, %v2701_v12 }

</bundles_post_ra>
